<compile_context>
chip_gen: v5e
topology: v5e:2x2
jax: 0.10.0
libtpu: 0.0.40
codegen_flags: <defaults>
</compile_context>

<pallas_src>
import math
from functools import partial

import jax
import jax.numpy as jnp
from jax.experimental import pallas as pl
from jax.experimental.pallas import tpu as pltpu


# ---------------------------------------------------------------------------
# Generation-aware config: GEMM tile caps + scoped-VMEM limit.
# ---------------------------------------------------------------------------
def _chip_config():
    vmem_cap = 64 * 1024 * 1024            # assume v7x (64 MiB) if query fails
    try:
        vmem_cap = int(pltpu.get_tpu_info().vmem_capacity_bytes)
    except Exception:
        pass
    if vmem_cap >= 100 * 1024 * 1024:      # v5e / v6e: 128 MiB physical VMEM
        return {"vmem_limit": 100 * 1024 * 1024, "tm": 512, "tn": 1024, "tk": 2048}
    # v7x: 64 MiB physical VMEM -> conservative tiles + 48 MiB scoped cap.
    return {"vmem_limit": 48 * 1024 * 1024, "tm": 256, "tn": 512, "tk": 1024}


_CFG = _chip_config()

# Finite "-inf": avoids NaN from (-inf) - (-inf) in tiled/online softmax.
_NEG_INF = -1e30


def _pick_tile(dim, target, align):
    """Largest tile <= target that divides `dim` and is a multiple of `align`.
    Falls back to the full dim (always a legal block shape) when dim <= target
    or no aligned divisor exists."""
    if dim <= target:
        return dim
    t = (target // align) * align
    while t >= align:
        if dim % t == 0:
            return t
        t -= align
    return dim


def _pad_cols(a, mult):
    pad = (-a.shape[1]) % mult
    return a if pad == 0 else jnp.pad(a, ((0, 0), (0, pad)))


def _pad_rows(a, mult):
    pad = (-a.shape[0]) % mult
    return a if pad == 0 else jnp.pad(a, ((0, pad), (0, 0)))


# ---------------------------------------------------------------------------
# Generic tiled GEMM with fused bias / residual / RMSNorm prologue & epilogue.
# ---------------------------------------------------------------------------
def _make_gemm_kernel(has_bias, has_residual, fuse_ln_pre, fuse_ln_post, eps):
    def kernel(*refs):
        it = iter(refs)
        x_ref = next(it)
        w_ref = next(it)
        b_ref = next(it) if has_bias else None
        r_ref = next(it) if has_residual else None
        ln_pre_ref = next(it) if fuse_ln_pre else None
        ln_post_ref = next(it) if fuse_ln_post else None
        o_ref = next(it)
        acc_ref = next(it)

        k = pl.program_id(2)

        @pl.when(k == 0)
        def _():
            acc_ref[...] = jnp.zeros_like(acc_ref)

        x = x_ref[...]
        if fuse_ln_pre:
            # RMSNorm prologue (the full K dim is in this block, so the row
            # mean is exact).
            xf = x.astype(jnp.float32)
            inv = jax.lax.rsqrt(jnp.mean(xf * xf, axis=-1, keepdims=True) + eps)
            x = (xf * inv).astype(x_ref.dtype) * ln_pre_ref[...].astype(x_ref.dtype)
        # Native-dtype operands straight to the MXU; f32 accumulation.
        acc_ref[...] += jnp.dot(x, w_ref[...], preferred_element_type=jnp.float32)

        @pl.when(k == pl.num_programs(2) - 1)
        def _():
            acc = acc_ref[...]
            if has_bias:
                acc = acc + b_ref[...].astype(jnp.float32)
            if has_residual:
                acc = acc + r_ref[...].astype(jnp.float32)
            if fuse_ln_post:
                # RMSNorm epilogue (the full N dim is in this block).
                y = acc.astype(o_ref.dtype).astype(jnp.float32)
                inv = jax.lax.rsqrt(jnp.mean(y * y, axis=-1, keepdims=True) + eps)
                o_ref[...] = (y * inv).astype(o_ref.dtype) * ln_post_ref[...].astype(o_ref.dtype)
            else:
                o_ref[...] = acc.astype(o_ref.dtype)

    return kernel


def gemm(x, w, bias=None, residual=None, ln_pre=None, ln_post=None, eps=1e-6):
    """out = maybe_rmsnorm( rmsnorm_rows?(x) @ w + bias + residual )."""
    M, K = x.shape
    K2, N = w.shape
    assert K == K2
    out_dtype = x.dtype
    tm_cap, tn_cap, tk_cap = _CFG["tm"], _CFG["tn"], _CFG["tk"]

    # Harden awkward shapes: a K/N larger than the tile cap with no 128-aligned
    # divisor is zero-padded (safe for the dot) instead of falling back to a
    # full-dim tile that could blow v7x's scoped VMEM.
    if K > tk_cap and K % 128 != 0:
        assert ln_pre is None
        x = _pad_cols(x, 128)
        w = _pad_rows(w, 128)
        K = x.shape[1]
    orig_N = N
    if N > tn_cap and N % 128 != 0:
        assert ln_post is None
        new_N = N + ((-N) % 128)
        w = _pad_cols(w, 128)
        if bias is not None:
            bias = jnp.pad(bias, (0, new_N - N))
        if residual is not None:
            residual = _pad_cols(residual, 128)
        N = new_N

    tm = _pick_tile(M, tm_cap, 8)
    tn = _pick_tile(N, tn_cap, 128)
    tk = _pick_tile(K, tk_cap, 128)
    if ln_pre is not None:
        assert tk == K, "RMSNorm prologue needs the full K dim in one tile"
    if ln_post is not None:
        assert tn == N, "RMSNorm epilogue needs the full N dim in one tile"
    grid = (M // tm, N // tn, K // tk)

    in_specs = [
        pl.BlockSpec((tm, tk), lambda i, j, k: (i, k)),
        pl.BlockSpec((tk, tn), lambda i, j, k: (k, j)),
    ]
    args = [x, w]
    if bias is not None:
        in_specs.append(pl.BlockSpec((1, tn), lambda i, j, k: (0, j)))
        args.append(bias.reshape(1, N))
    if residual is not None:
        in_specs.append(pl.BlockSpec((tm, tn), lambda i, j, k: (i, j)))
        args.append(residual)
    if ln_pre is not None:
        in_specs.append(pl.BlockSpec((1, tk), lambda i, j, k: (0, k)))
        args.append(ln_pre.reshape(1, K))
    if ln_post is not None:
        in_specs.append(pl.BlockSpec((1, tn), lambda i, j, k: (0, j)))
        args.append(ln_post.reshape(1, N))

    itemsize = jnp.dtype(out_dtype).itemsize
    n_i, n_j, _ = grid
    bytes_accessed = (M * K * n_j + K * N * n_i + M * N) * itemsize
    if bias is not None:
        bytes_accessed += N * n_i * itemsize
    if residual is not None:
        bytes_accessed += M * N * itemsize
    transcendentals = M if (ln_pre is not None or ln_post is not None) else 0

    out = pl.pallas_call(
        _make_gemm_kernel(bias is not None, residual is not None,
                          ln_pre is not None, ln_post is not None, eps),
        out_shape=jax.ShapeDtypeStruct((M, N), out_dtype),
        grid_spec=pltpu.PrefetchScalarGridSpec(
            num_scalar_prefetch=0,
            grid=grid,
            in_specs=in_specs,
            out_specs=pl.BlockSpec((tm, tn), lambda i, j, k: (i, j)),
            scratch_shapes=[pltpu.VMEM((tm, tn), jnp.float32)],
        ),
        compiler_params=pltpu.CompilerParams(
            dimension_semantics=("parallel", "parallel", "arbitrary"),
            vmem_limit_bytes=_CFG["vmem_limit"],
        ),
        cost_estimate=pl.CostEstimate(
            flops=int(2 * M * N * K),
            transcendentals=int(transcendentals),
            bytes_accessed=int(bytes_accessed),
        ),
    )(*args)
    if N != orig_N:
        out = out[:, :orig_N]
    return out


# ---------------------------------------------------------------------------
# Dual GEMM for the SwiGLU gate/up projections: one pass over h, the gate
# tensor never round-trips HBM; silu(gate)*up is applied in the finalize.
# ---------------------------------------------------------------------------
def _make_gateup_kernel():
    def kernel(x_ref, w1_ref, w2_ref, b1_ref, b2_ref, o_ref, acc_g, acc_u):
        k = pl.program_id(2)

        @pl.when(k == 0)
        def _():
            acc_g[...] = jnp.zeros_like(acc_g)
            acc_u[...] = jnp.zeros_like(acc_u)

        x = x_ref[...]
        acc_g[...] += jnp.dot(x, w1_ref[...], preferred_element_type=jnp.float32)
        acc_u[...] += jnp.dot(x, w2_ref[...], preferred_element_type=jnp.float32)

        @pl.when(k == pl.num_programs(2) - 1)
        def _():
            g = acc_g[...] + b1_ref[...].astype(jnp.float32)
            u = acc_u[...] + b2_ref[...].astype(jnp.float32)
            o_ref[...] = ((g * jax.nn.sigmoid(g)) * u).astype(o_ref.dtype)

    return kernel


def gateup_gemm(x, w1, b1, w2, b2):
    """silu(x @ w1 + b1) * (x @ w2 + b2)."""
    M, K = x.shape
    _, N = w1.shape
    assert w2.shape == (K, N)
    tm = _pick_tile(M, _CFG["tm"], 8)
    tn = _pick_tile(N, _CFG["tn"], 128)
    tk = _pick_tile(K, _CFG["tk"], 128)
    # TODO(synk): apply the same pad-to-128 hardening as gemm() for awkward N/K.
    grid = (M // tm, N // tn, K // tk)

    itemsize = jnp.dtype(x.dtype).itemsize
    n_i, n_j, _ = grid
    bytes_accessed = (M * K * n_j + 2 * K * N * n_i + M * N + 2 * N * n_i) * itemsize

    return pl.pallas_call(
        _make_gateup_kernel(),
        out_shape=jax.ShapeDtypeStruct((M, N), x.dtype),
        grid_spec=pltpu.PrefetchScalarGridSpec(
            num_scalar_prefetch=0,
            grid=grid,
            in_specs=[
                pl.BlockSpec((tm, tk), lambda i, j, k: (i, k)),
                pl.BlockSpec((tk, tn), lambda i, j, k: (k, j)),
                pl.BlockSpec((tk, tn), lambda i, j, k: (k, j)),
                pl.BlockSpec((1, tn), lambda i, j, k: (0, j)),
                pl.BlockSpec((1, tn), lambda i, j, k: (0, j)),
            ],
            out_specs=pl.BlockSpec((tm, tn), lambda i, j, k: (i, j)),
            scratch_shapes=[pltpu.VMEM((tm, tn), jnp.float32),
                            pltpu.VMEM((tm, tn), jnp.float32)],
        ),
        compiler_params=pltpu.CompilerParams(
            dimension_semantics=("parallel", "parallel", "arbitrary"),
            vmem_limit_bytes=_CFG["vmem_limit"],
        ),
        cost_estimate=pl.CostEstimate(
            flops=int(4 * M * N * K),
            transcendentals=int(M * N),
            bytes_accessed=int(bytes_accessed),
        ),
    )(x, w1, w2, b1.reshape(1, N), b2.reshape(1, N))


# ---------------------------------------------------------------------------
# Standalone RMSNorm kernel (fallback when the GEMM fusions are gated off,
# e.g. very large E that does not fit a single K/N tile).
# ---------------------------------------------------------------------------
def _make_rmsnorm_kernel(eps):
    def kernel(x_ref, w_ref, o_ref):
        x = x_ref[...].astype(jnp.float32)
        inv = jax.lax.rsqrt(jnp.mean(x * x, axis=-1, keepdims=True) + eps)
        o_ref[...] = (x * inv).astype(o_ref.dtype) * w_ref[...].astype(o_ref.dtype)

    return kernel


def rmsnorm(x, weight, eps=1e-6):
    M, D = x.shape
    tm = _pick_tile(M, _CFG["tm"], 8)
    return pl.pallas_call(
        _make_rmsnorm_kernel(eps),
        out_shape=jax.ShapeDtypeStruct((M, D), x.dtype),
        grid_spec=pltpu.PrefetchScalarGridSpec(
            num_scalar_prefetch=0,
            grid=(M // tm,),
            in_specs=[pl.BlockSpec((tm, D), lambda i: (i, 0)),
                      pl.BlockSpec((1, D), lambda i: (0, 0))],
            out_specs=pl.BlockSpec((tm, D), lambda i: (i, 0)),
        ),
        compiler_params=pltpu.CompilerParams(
            dimension_semantics=("parallel",),
            vmem_limit_bytes=_CFG["vmem_limit"],
        ),
    )(x, weight.reshape(1, D))


# ---------------------------------------------------------------------------
# Flash-style attention: grid = (B*H, S/tq, S/tk), online softmax over KV tiles.
# ---------------------------------------------------------------------------
def _make_flash_kernel(scale, causal, tq, tk):
    def kernel(q_ref, k_ref, v_ref, o_ref, m_ref, l_ref, acc_ref):
        qi = pl.program_id(1)
        ki = pl.program_id(2)

        @pl.when(ki == 0)
        def _():
            m_ref[...] = jnp.full_like(m_ref, -jnp.inf)
            l_ref[...] = jnp.zeros_like(l_ref)
            acc_ref[...] = jnp.zeros_like(acc_ref)

        def process_block():
            q = q_ref[0]                         # (tq, D) native dtype -> MXU
            k = k_ref[0]                         # (tk, D)
            v = v_ref[0]                         # (tk, D)
            s = jax.lax.dot_general(q, k, (((1,), (1,)), ((), ())),
                                    preferred_element_type=jnp.float32) * scale
            if causal:
                row = qi * tq + jax.lax.broadcasted_iota(jnp.int32, (tq, tk), 0)
                col = ki * tk + jax.lax.broadcasted_iota(jnp.int32, (tq, tk), 1)
                s = jnp.where(col > row, _NEG_INF, s)
            m_prev = m_ref[...]
            m_new = jnp.maximum(m_prev, jnp.max(s, axis=-1, keepdims=True))
            alpha = jnp.exp(m_prev - m_new)
            p = jnp.exp(s - m_new)
            l_ref[...] = alpha * l_ref[...] + jnp.sum(p, axis=-1, keepdims=True)
            acc_ref[...] = alpha * acc_ref[...] + jnp.dot(
                p.astype(v.dtype), v, preferred_element_type=jnp.float32)
            m_ref[...] = m_new

        if causal:
            # Skip KV blocks strictly above the diagonal (fully masked).
            @pl.when(ki * tk <= qi * tq + (tq - 1))
            def _():
                process_block()
        else:
            process_block()

        @pl.when(ki == pl.num_programs(2) - 1)
        def _():
            l = l_ref[...]
            inv = pl.reciprocal(l, approx=True)      # EUP slot, off the VALU
            inv = inv * (2.0 - l * inv)              # one NR step: near-exact 1/l
            o_ref[0] = (acc_ref[...] * inv).astype(o_ref.dtype)

    return kernel


def attention(qkv, B, S, n_head, head_dim, causal=True):
    """qkv: (B*S, 3*E) fused projection -> (B*S, E) head-concatenated output."""
    E = n_head * head_dim
    BH = B * n_head

    # Layout plumbing (XLA, outside the kernel): split the fused slab into
    # per-head lane-dense (BH, S, D) operands so BlockSpec does the head
    # extraction and the kernel never slices along the lane axis.
    qkv4 = qkv.reshape(B, S, 3, n_head, head_dim)

    def heads(i):
        return jnp.transpose(qkv4[:, :, i], (0, 2, 1, 3)).reshape(BH, S, head_dim)

    q, k, v = heads(0), heads(1), heads(2)

    tq = _pick_tile(S, 256, 8)
    tk = tq                    # equal Q/KV tiles keep the causal block skip simple
    nq = S // tq
    grid = (BH, nq, S // tk)
    scale = 1.0 / math.sqrt(head_dim)

    itemsize = jnp.dtype(qkv.dtype).itemsize
    bytes_accessed = (BH * S * head_dim * (1 + 2 * nq) + BH * S * head_dim) * itemsize

    out = pl.pallas_call(
        _make_flash_kernel(scale, causal, tq, tk),
        out_shape=jax.ShapeDtypeStruct((BH, S, head_dim), qkv.dtype),
        grid_spec=pltpu.PrefetchScalarGridSpec(
            num_scalar_prefetch=0,
            grid=grid,
            in_specs=[
                pl.BlockSpec((1, tq, head_dim), lambda bh, qi, ki: (bh, qi, 0)),
                pl.BlockSpec((1, tk, head_dim), lambda bh, qi, ki: (bh, ki, 0)),
                pl.BlockSpec((1, tk, head_dim), lambda bh, qi, ki: (bh, ki, 0)),
            ],
            out_specs=pl.BlockSpec((1, tq, head_dim), lambda bh, qi, ki: (bh, qi, 0)),
            scratch_shapes=[
                pltpu.VMEM((tq, 1), jnp.float32),          # running max
                pltpu.VMEM((tq, 1), jnp.float32),          # running denominator
                pltpu.VMEM((tq, head_dim), jnp.float32),   # output accumulator
            ],
        ),
        compiler_params=pltpu.CompilerParams(
            dimension_semantics=("parallel", "parallel", "arbitrary"),
            vmem_limit_bytes=_CFG["vmem_limit"],
        ),
        cost_estimate=pl.CostEstimate(
            flops=int(4 * BH * S * S * head_dim),
            transcendentals=int(BH * S * S),
            bytes_accessed=int(bytes_accessed),
        ),
    )(q, k, v)

    # (BH, S, D) -> (B*S, E) head-concatenated slab for the out-projection GEMM.
    att = jnp.transpose(out.reshape(B, n_head, S, head_dim), (0, 2, 1, 3))
    return att.reshape(B * S, E)


# ---------------------------------------------------------------------------
# One-time parameter fusion (call OUTSIDE the jitted forward).
# ---------------------------------------------------------------------------
def prepare_params(params):
    n_head, E, D = params["wq"].shape

    def fw(w):   # (H, E, D) -> (E, H*D), head-major columns
        return jnp.transpose(w, (1, 0, 2)).reshape(E, n_head * D)

    def fb(b):   # (H, 1, D) -> (H*D,)
        return b.reshape(n_head * D)

    fused = dict(params)
    fused["w_qkv"] = jnp.concatenate(
        [fw(params["wq"]), fw(params["wk"]), fw(params["wv"])], axis=1)
    fused["b_qkv"] = jnp.concatenate(
        [fb(params["bq"]), fb(params["bk"]), fb(params["bv"])], axis=0)
    return fused


# ---------------------------------------------------------------------------
# Full TransformerBlock forward.
# ---------------------------------------------------------------------------
def transformer_block(x, p, n_head, mask=True, eps=1e-6):
    B, S, E = x.shape
    head_dim = E // n_head
    x2 = x.reshape(B * S, E)

    fuse_ln1 = E <= _CFG["tk"]   # RMSNorm1 folds into the QKV GEMM prologue
    fuse_ln2 = E <= _CFG["tn"]   # RMSNorm2 folds into the W3 GEMM epilogue

    # h = out_linear(attention(RMSNorm1(x))) + x
    if fuse_ln1:
        qkv = gemm(x2, p["w_qkv"], p["b_qkv"], ln_pre=p["ln1_w"], eps=eps)
    else:
        qkv = gemm(rmsnorm(x2, p["ln1_w"], eps), p["w_qkv"], p["b_qkv"])
    att = attention(qkv, B, S, n_head, head_dim, causal=mask)       # (B*S, E)
    h = gemm(att, p["wo"], p["bo"], residual=x2)                    # + residual

    # out = RMSNorm2( W3( silu(W1 h) * (W2 h) ) + h )
    act = gateup_gemm(h, p["w1"], p["b1"], p["w2"], p["b2"])        # (B*S, F)
    out = gemm(act, p["w3"], p["b3"], residual=h,
               ln_post=p["ln2_w"] if fuse_ln2 else None, eps=eps)
    if not fuse_ln2:
        out = rmsnorm(out, p["ln2_w"], eps)
    return out.reshape(B, S, E)


# ---------------------------------------------------------------------------
# Pure-JAX reference (mirrors the PyTorch module semantics).
# ---------------------------------------------------------------------------
def reference_block(x, params, n_head, mask=True, eps=1e-6):
    hp = jax.lax.Precision.HIGHEST

    def rms(v, w):
        vf = v.astype(jnp.float32)
        y = vf * jax.lax.rsqrt(jnp.mean(vf * vf, axis=-1, keepdims=True) + eps)
        return y.astype(v.dtype) * w

    B, S, E = x.shape
    D = E // n_head
    xn = rms(x, params["ln1_w"])
    q = jnp.einsum("bsh,nhd->bnsd", xn, params["wq"], precision=hp) + params["bq"][None]
    k = jnp.einsum("bsh,nhd->bnsd", xn, params["wk"], precision=hp) + params["bk"][None]
    v = jnp.einsum("bsh,nhd->bnsd", xn, params["wv"], precision=hp) + params["bv"][None]
    s = jnp.einsum("bnqd,bnkd->bnqk", q, k, precision=hp) * (1.0 / math.sqrt(D))
    if mask:
        causal = jnp.triu(jnp.ones((S, S), dtype=bool), k=1)
        s = jnp.where(causal[None, None], -jnp.inf, s)
    p = jax.nn.softmax(s, axis=-1)
    att = jnp.einsum("bnqk,bnkd->bnqd", p, v, precision=hp)
    att = jnp.transpose(att, (0, 2, 1, 3)).reshape(B, S, E)
    h = jnp.einsum("bse,ef->bsf", att, params["wo"], precision=hp) + params["bo"] + x
    g = jnp.einsum("bse,ef->bsf", h, params["w1"], precision=hp) + params["b1"]
    u = jnp.einsum("bse,ef->bsf", h, params["w2"], precision=hp) + params["b2"]
    ff = jnp.einsum("bsf,fe->bse", jax.nn.silu(g) * u, params["w3"], precision=hp) + params["b3"]
    return rms(ff + h, params["ln2_w"])


if __name__ == "__main__":
    B, S = 2, 8
    n_head, embed_dim, feed_hid_dim = 4, 32, 64
    head_dim = embed_dim // n_head

    key = jax.random.PRNGKey(0)
    ks = jax.random.split(key, 17)

    def xavier(k, shape, fan_in, fan_out):
        lim = math.sqrt(6.0 / (fan_in + fan_out))
        return jax.random.uniform(k, shape, minval=-lim, maxval=lim, dtype=jnp.float32)

    params = dict(
        wq=xavier(ks[0], (n_head, embed_dim, head_dim), embed_dim, head_dim),
        wk=xavier(ks[1], (n_head, embed_dim, head_dim), embed_dim, head_dim),
        wv=xavier(ks[2], (n_head, embed_dim, head_dim), embed_dim, head_dim),
        bq=0.02 * jax.random.normal(ks[3], (n_head, 1, head_dim), jnp.float32),
        bk=0.02 * jax.random.normal(ks[4], (n_head, 1, head_dim), jnp.float32),
        bv=0.02 * jax.random.normal(ks[5], (n_head, 1, head_dim), jnp.float32),
        wo=xavier(ks[6], (embed_dim, embed_dim), embed_dim, embed_dim),
        bo=0.02 * jax.random.normal(ks[7], (embed_dim,), jnp.float32),
        w1=xavier(ks[8], (embed_dim, feed_hid_dim), embed_dim, feed_hid_dim),
        b1=0.02 * jax.random.normal(ks[9], (feed_hid_dim,), jnp.float32),
        w2=xavier(ks[10], (embed_dim, feed_hid_dim), embed_dim, feed_hid_dim),
        b2=0.02 * jax.random.normal(ks[11], (feed_hid_dim,), jnp.float32),
        w3=xavier(ks[12], (feed_hid_dim, embed_dim), feed_hid_dim, embed_dim),
        b3=0.02 * jax.random.normal(ks[13], (embed_dim,), jnp.float32),
        ln1_w=1.0 + 0.05 * jax.random.normal(ks[14], (embed_dim,), jnp.float32),
        ln2_w=1.0 + 0.05 * jax.random.normal(ks[15], (embed_dim,), jnp.float32),
    )

    x = jax.random.normal(ks[16], (B, S, embed_dim), dtype=jnp.float32)

    # One-time weight fusion, hoisted out of the jitted forward.
    fused_params = prepare_params(params)

    block_fn = jax.jit(partial(transformer_block, n_head=n_head, mask=True))
    out = jax.block_until_ready(block_fn(x, fused_params))
    ref = jax.block_until_ready(reference_block(x, params, n_head, mask=True))

    assert out.shape == (B, S, embed_dim), out.shape
    max_err = float(jnp.max(jnp.abs(out - ref)))
    assert jnp.allclose(out, ref, atol=2e-3, rtol=2e-3), max_err

    print("KERNEL_OK")
</pallas_src>

<mosaic_0001>
module attributes {stable_mosaic.version = 11 : i64} {
  func.func @kernel(%arg0: i32, %arg1: i32, %arg2: i32, %arg3: memref<16x32xf32, #tpu.memory_space<vmem>>, %arg4: memref<32x96xf32, #tpu.memory_space<vmem>>, %arg5: memref<1x96xf32, #tpu.memory_space<vmem>>, %arg6: memref<1x32xf32, #tpu.memory_space<vmem>>, %arg7: memref<16x96xf32, #tpu.memory_space<vmem>>, %arg8: memref<16x96xf32, #tpu.memory_space<vmem>>) attributes {dimension_semantics = [#tpu.dimension_semantics<parallel>, #tpu.dimension_semantics<parallel>, #tpu.dimension_semantics<arbitrary>], iteration_bounds = array<i64: 1, 1, 1>, scalar_prefetch = 0 : i64, scratch_operands = 1 : i64, tpu.core_type = #tpu.core_type<tc>, window_params = [{transform_indices = @transform_0, window_bounds = array<i64: 16, 32>}, {transform_indices = @transform_1, window_bounds = array<i64: 32, 96>}, {transform_indices = @transform_2, window_bounds = array<i64: 1, 96>}, {transform_indices = @transform_3, window_bounds = array<i64: 1, 32>}, {transform_indices = @transform_4, window_bounds = array<i64: 16, 96>}]} {
    %c0_i32 = arith.constant 0 : i32
    %0 = arith.cmpi eq, %arg2, %c0_i32 : i32
    %1 = arith.extui %0 : i1 to i32
    %c0_i32_0 = arith.constant 0 : i32
    %2 = arith.cmpi ne, %1, %c0_i32_0 : i32
    scf.if %2 {
      %cst_15 = arith.constant 0.000000e+00 : f32
      %25 = vector.broadcast %cst_15 : f32 to vector<16x96xf32>
      %c0_16 = arith.constant 0 : index
      %c0_17 = arith.constant 0 : index
      %26 = vector.load %arg8[%c0_16, %c0_17] : memref<16x96xf32, #tpu.memory_space<vmem>>, vector<16x96xf32>
      tpu.vector_store %arg8[%c0_16, %c0_17], %25 {strides = array<i32>} : memref<16x96xf32, #tpu.memory_space<vmem>>, vector<16x96xf32>,
    } else {
    }
    %c0 = arith.constant 0 : index
    %c0_1 = arith.constant 0 : index
    %3 = vector.load %arg3[%c0, %c0_1] : memref<16x32xf32, #tpu.memory_space<vmem>>, vector<16x32xf32>
    %4 = arith.mulf %3, %3 : vector<16x32xf32>
    %cst = arith.constant dense<0.000000e+00> : vector<16xf32>
    %5 = vector.multi_reduction <add>, %4, %cst [1] : vector<16x32xf32> to vector<16xf32>
    %6 = vector.shape_cast %5 : vector<16xf32> to vector<16x1xf32>
    %cst_2 = arith.constant 3.200000e+01 : f32
    %7 = vector.broadcast %cst_2 : f32 to vector<16x1xf32>
    %8 = arith.divf %6, %7 : vector<16x1xf32>
    %cst_3 = arith.constant 9.99999997E-7 : f32
    %9 = vector.broadcast %cst_3 : f32 to vector<16x1xf32>
    %10 = arith.addf %8, %9 : vector<16x1xf32>
    %11 = math.rsqrt %10 : vector<16x1xf32>
    %12 = vector.broadcast %11 : vector<16x1xf32> to vector<16x32xf32>
    %13 = arith.mulf %3, %12 : vector<16x32xf32>
    %c0_4 = arith.constant 0 : index
    %c0_5 = arith.constant 0 : index
    %14 = vector.load %arg6[%c0_4, %c0_5] : memref<1x32xf32, #tpu.memory_space<vmem>>, vector<1x32xf32>
    %15 = vector.broadcast %14 : vector<1x32xf32> to vector<16x32xf32>
    %16 = arith.mulf %13, %15 : vector<16x32xf32>
    %c0_6 = arith.constant 0 : index
    %c0_7 = arith.constant 0 : index
    %17 = vector.load %arg8[%c0_6, %c0_7] : memref<16x96xf32, #tpu.memory_space<vmem>>, vector<16x96xf32>
    %c0_8 = arith.constant 0 : index
    %c0_9 = arith.constant 0 : index
    %18 = vector.load %arg4[%c0_8, %c0_9] : memref<32x96xf32, #tpu.memory_space<vmem>>, vector<32x96xf32>
    %cst_10 = arith.constant dense<0.000000e+00> : vector<16x96xf32>
    %19 = tpu.matmul %16, %18, %cst_10 {dimension_numbers = #tpu.dot_dimension_numbers<[1], [0], [0], [1], [0, 0, 1, 1], [], []>} : vector<16x32xf32>, vector<32x96xf32>, vector<16x96xf32> -> vector<16x96xf32>
    %20 = arith.addf %17, %19 : vector<16x96xf32>
    %c0_11 = arith.constant 0 : index
    %c0_12 = arith.constant 0 : index
    %21 = vector.load %arg8[%c0_11, %c0_12] : memref<16x96xf32, #tpu.memory_space<vmem>>, vector<16x96xf32>
    tpu.vector_store %arg8[%c0_11, %c0_12], %20 {strides = array<i32>} : memref<16x96xf32, #tpu.memory_space<vmem>>, vector<16x96xf32>,
    %c0_i32_13 = arith.constant 0 : i32
    %22 = arith.cmpi eq, %arg2, %c0_i32_13 : i32
    %23 = arith.extui %22 : i1 to i32
    %c0_i32_14 = arith.constant 0 : i32
    %24 = arith.cmpi ne, %23, %c0_i32_14 : i32
    scf.if %24 {
      %c0_15 = arith.constant 0 : index
      %c0_16 = arith.constant 0 : index
      %25 = vector.load %arg8[%c0_15, %c0_16] : memref<16x96xf32, #tpu.memory_space<vmem>>, vector<16x96xf32>
      %c0_17 = arith.constant 0 : index
      %c0_18 = arith.constant 0 : index
      %26 = vector.load %arg5[%c0_17, %c0_18] : memref<1x96xf32, #tpu.memory_space<vmem>>, vector<1x96xf32>
      %27 = vector.broadcast %26 : vector<1x96xf32> to vector<16x96xf32>
      %28 = arith.addf %25, %27 : vector<16x96xf32>
      %c0_19 = arith.constant 0 : index
      %c0_20 = arith.constant 0 : index
      %29 = vector.load %arg7[%c0_19, %c0_20] : memref<16x96xf32, #tpu.memory_space<vmem>>, vector<16x96xf32>
      tpu.vector_store %arg7[%c0_19, %c0_20], %28 {strides = array<i32>} : memref<16x96xf32, #tpu.memory_space<vmem>>, vector<16x96xf32>,
    } else {
    }
    return
  }
  func.func @transform_0(%arg0: i32, %arg1: i32, %arg2: i32) -> (i32, i32) {
    %c0_i32 = arith.constant 0 : i32
    return %arg0, %arg2 : i32, i32
  }
  func.func @transform_1(%arg0: i32, %arg1: i32, %arg2: i32) -> (i32, i32) {
    %c0_i32 = arith.constant 0 : i32
    return %arg2, %arg1 : i32, i32
  }
  func.func @transform_2(%arg0: i32, %arg1: i32, %arg2: i32) -> (i32, i32) {
    %c0_i32 = arith.constant 0 : i32
    %c0_i32_0 = arith.constant 0 : i32
    return %c0_i32, %arg1 : i32, i32
  }
  func.func @transform_3(%arg0: i32, %arg1: i32, %arg2: i32) -> (i32, i32) {
    %c0_i32 = arith.constant 0 : i32
    %c0_i32_0 = arith.constant 0 : i32
    return %c0_i32, %arg2 : i32, i32
  }
  func.func @transform_4(%arg0: i32, %arg1: i32, %arg2: i32) -> (i32, i32) {
    %c0_i32 = arith.constant 0 : i32
    return %arg0, %arg1 : i32, i32
  }
}

module attributes {stable_mosaic.version = 11 : i64} {
  func.func @kernel(%arg0: i32, %arg1: i32, %arg2: i32, %arg3: memref<1x8x8xf32, #tpu.memory_space<vmem>>, %arg4: memref<1x8x8xf32, #tpu.memory_space<vmem>>, %arg5: memref<1x8x8xf32, #tpu.memory_space<vmem>>, %arg6: memref<1x8x8xf32, #tpu.memory_space<vmem>>, %arg7: memref<8x1xf32, #tpu.memory_space<vmem>>, %arg8: memref<8x1xf32, #tpu.memory_space<vmem>>, %arg9: memref<8x8xf32, #tpu.memory_space<vmem>>) attributes {dimension_semantics = [#tpu.dimension_semantics<parallel>, #tpu.dimension_semantics<parallel>, #tpu.dimension_semantics<arbitrary>], iteration_bounds = array<i64: 8, 1, 1>, scalar_prefetch = 0 : i64, scratch_operands = 3 : i64, tpu.core_type = #tpu.core_type<tc>, window_params = [{transform_indices = @transform_0, window_bounds = array<i64: 1, 8, 8>}, {transform_indices = @transform_1, window_bounds = array<i64: 1, 8, 8>}, {transform_indices = @transform_2, window_bounds = array<i64: 1, 8, 8>}, {transform_indices = @transform_3, window_bounds = array<i64: 1, 8, 8>}]} {
    %c0_i32 = arith.constant 0 : i32
    %0 = arith.cmpi eq, %arg2, %c0_i32 : i32
    %1 = arith.extui %0 : i1 to i32
    %c0_i32_0 = arith.constant 0 : i32
    %2 = arith.cmpi ne, %1, %c0_i32_0 : i32
    scf.if %2 {
      %cst = arith.constant 0xFF800000 : f32
      %12 = vector.broadcast %cst : f32 to vector<8x1xf32>
      %c0 = arith.constant 0 : index
      %c0_5 = arith.constant 0 : index
      %13 = vector.load %arg7[%c0, %c0_5] : memref<8x1xf32, #tpu.memory_space<vmem>>, vector<8x1xf32>
      tpu.vector_store %arg7[%c0, %c0_5], %12 {strides = array<i32>} : memref<8x1xf32, #tpu.memory_space<vmem>>, vector<8x1xf32>,
      %cst_6 = arith.constant 0.000000e+00 : f32
      %14 = vector.broadcast %cst_6 : f32 to vector<8x1xf32>
      %c0_7 = arith.constant 0 : index
      %c0_8 = arith.constant 0 : index
      %15 = vector.load %arg8[%c0_7, %c0_8] : memref<8x1xf32, #tpu.memory_space<vmem>>, vector<8x1xf32>
      tpu.vector_store %arg8[%c0_7, %c0_8], %14 {strides = array<i32>} : memref<8x1xf32, #tpu.memory_space<vmem>>, vector<8x1xf32>,
      %cst_9 = arith.constant 0.000000e+00 : f32
      %16 = vector.broadcast %cst_9 : f32 to vector<8x8xf32>
      %c0_10 = arith.constant 0 : index
      %c0_11 = arith.constant 0 : index
      %17 = vector.load %arg9[%c0_10, %c0_11] : memref<8x8xf32, #tpu.memory_space<vmem>>, vector<8x8xf32>
      tpu.vector_store %arg9[%c0_10, %c0_11], %16 {strides = array<i32>} : memref<8x8xf32, #tpu.memory_space<vmem>>, vector<8x8xf32>,
    } else {
    }
    %c8_i32 = arith.constant 8 : i32
    %3 = arith.muli %arg2, %c8_i32 : i32
    %c8_i32_1 = arith.constant 8 : i32
    %4 = arith.muli %arg1, %c8_i32_1 : i32
    %c7_i32 = arith.constant 7 : i32
    %5 = arith.addi %4, %c7_i32 : i32
    %6 = arith.cmpi sle, %3, %5 : i32
    %7 = arith.extui %6 : i1 to i32
    %c0_i32_2 = arith.constant 0 : i32
    %8 = arith.cmpi ne, %7, %c0_i32_2 : i32
    scf.if %8 {
      %c0 = arith.constant 0 : index
      %c0_5 = arith.constant 0 : index
      %c0_6 = arith.constant 0 : index
      %12 = vector.load %arg3[%c0, %c0_5, %c0_6] : memref<1x8x8xf32, #tpu.memory_space<vmem>>, vector<1x8x8xf32>
      %13 = vector.shape_cast %12 : vector<1x8x8xf32> to vector<8x8xf32>
      %c0_7 = arith.constant 0 : index
      %c0_8 = arith.constant 0 : index
      %c0_9 = arith.constant 0 : index
      %14 = vector.load %arg4[%c0_7, %c0_8, %c0_9] : memref<1x8x8xf32, #tpu.memory_space<vmem>>, vector<1x8x8xf32>
      %15 = vector.shape_cast %14 : vector<1x8x8xf32> to vector<8x8xf32>
      %c0_10 = arith.constant 0 : index
      %c0_11 = arith.constant 0 : index
      %c0_12 = arith.constant 0 : index
      %16 = vector.load %arg5[%c0_10, %c0_11, %c0_12] : memref<1x8x8xf32, #tpu.memory_space<vmem>>, vector<1x8x8xf32>
      %17 = vector.shape_cast %16 : vector<1x8x8xf32> to vector<8x8xf32>
      %cst = arith.constant dense<0.000000e+00> : vector<8x8xf32>
      %18 = tpu.matmul %13, %15, %cst {dimension_numbers = #tpu.dot_dimension_numbers<[1], [1], [0], [0], [0, 0, 1, 0], [], []>} : vector<8x8xf32>, vector<8x8xf32>, vector<8x8xf32> -> vector<8x8xf32>
      %cst_13 = arith.constant 0.353553385 : f32
      %19 = vector.broadcast %cst_13 : f32 to vector<8x8xf32>
      %20 = arith.mulf %18, %19 : vector<8x8xf32>
      %c8_i32_14 = arith.constant 8 : i32
      %21 = arith.muli %arg1, %c8_i32_14 : i32
      %22 = tpu.iota {dimensions = array<i32: 0>} : vector<8x8xi32>
      %23 = vector.broadcast %21 : i32 to vector<8x8xi32>
      %24 = arith.addi %23, %22 : vector<8x8xi32>
      %c8_i32_15 = arith.constant 8 : i32
      %25 = arith.muli %arg2, %c8_i32_15 : i32
      %26 = tpu.iota {dimensions = array<i32: 1>} : vector<8x8xi32>
      %27 = vector.broadcast %25 : i32 to vector<8x8xi32>
      %28 = arith.addi %27, %26 : vector<8x8xi32>
      %29 = arith.cmpi sgt, %28, %24 : vector<8x8xi32>
      %cst_16 = arith.constant -1.000000e+30 : f32
      %30 = vector.broadcast %cst_16 : f32 to vector<8x8xf32>
      %31 = arith.select %29, %30, %20 : vector<8x8xi1>, vector<8x8xf32>
      %c0_17 = arith.constant 0 : index
      %c0_18 = arith.constant 0 : index
      %32 = vector.load %arg7[%c0_17, %c0_18] : memref<8x1xf32, #tpu.memory_space<vmem>>, vector<8x1xf32>
      %cst_19 = arith.constant dense<0xFF800000> : vector<8xf32>
      %33 = vector.multi_reduction <maximumf>, %31, %cst_19 [1] : vector<8x8xf32> to vector<8xf32>
      %34 = vector.shape_cast %33 : vector<8xf32> to vector<8x1xf32>
      %35 = arith.maximumf %32, %34 : vector<8x1xf32>
      %36 = arith.subf %32, %35 : vector<8x1xf32>
      %37 = math.exp %36 : vector<8x1xf32>
      %38 = vector.broadcast %35 : vector<8x1xf32> to vector<8x8xf32>
      %39 = arith.subf %31, %38 : vector<8x8xf32>
      %40 = math.exp %39 : vector<8x8xf32>
      %c0_20 = arith.constant 0 : index
      %c0_21 = arith.constant 0 : index
      %41 = vector.load %arg8[%c0_20, %c0_21] : memref<8x1xf32, #tpu.memory_space<vmem>>, vector<8x1xf32>
      %42 = arith.mulf %37, %41 : vector<8x1xf32>
      %cst_22 = arith.constant dense<0.000000e+00> : vector<8xf32>
      %43 = vector.multi_reduction <add>, %40, %cst_22 [1] : vector<8x8xf32> to vector<8xf32>
      %44 = vector.shape_cast %43 : vector<8xf32> to vector<8x1xf32>
      %45 = arith.addf %42, %44 : vector<8x1xf32>
      %c0_23 = arith.constant 0 : index
      %c0_24 = arith.constant 0 : index
      %46 = vector.load %arg8[%c0_23, %c0_24] : memref<8x1xf32, #tpu.memory_space<vmem>>, vector<8x1xf32>
      tpu.vector_store %arg8[%c0_23, %c0_24], %45 {strides = array<i32>} : memref<8x1xf32, #tpu.memory_space<vmem>>, vector<8x1xf32>,
      %c0_25 = arith.constant 0 : index
      %c0_26 = arith.constant 0 : index
      %47 = vector.load %arg9[%c0_25, %c0_26] : memref<8x8xf32, #tpu.memory_space<vmem>>, vector<8x8xf32>
      %48 = vector.broadcast %37 : vector<8x1xf32> to vector<8x8xf32>
      %49 = arith.mulf %48, %47 : vector<8x8xf32>
      %cst_27 = arith.constant dense<0.000000e+00> : vector<8x8xf32>
      %50 = tpu.matmul %40, %17, %cst_27 {dimension_numbers = #tpu.dot_dimension_numbers<[1], [0], [0], [1], [0, 0, 1, 1], [], []>} : vector<8x8xf32>, vector<8x8xf32>, vector<8x8xf32> -> vector<8x8xf32>
      %51 = arith.addf %49, %50 : vector<8x8xf32>
      %c0_28 = arith.constant 0 : index
      %c0_29 = arith.constant 0 : index
      %52 = vector.load %arg9[%c0_28, %c0_29] : memref<8x8xf32, #tpu.memory_space<vmem>>, vector<8x8xf32>
      tpu.vector_store %arg9[%c0_28, %c0_29], %51 {strides = array<i32>} : memref<8x8xf32, #tpu.memory_space<vmem>>, vector<8x8xf32>,
      %c0_30 = arith.constant 0 : index
      %c0_31 = arith.constant 0 : index
      %53 = vector.load %arg7[%c0_30, %c0_31] : memref<8x1xf32, #tpu.memory_space<vmem>>, vector<8x1xf32>
      tpu.vector_store %arg7[%c0_30, %c0_31], %35 {strides = array<i32>} : memref<8x1xf32, #tpu.memory_space<vmem>>, vector<8x1xf32>,
    } else {
    }
    %c0_i32_3 = arith.constant 0 : i32
    %9 = arith.cmpi eq, %arg2, %c0_i32_3 : i32
    %10 = arith.extui %9 : i1 to i32
    %c0_i32_4 = arith.constant 0 : i32
    %11 = arith.cmpi ne, %10, %c0_i32_4 : i32
    scf.if %11 {
      %c0 = arith.constant 0 : index
      %c0_5 = arith.constant 0 : index
      %12 = vector.load %arg8[%c0, %c0_5] : memref<8x1xf32, #tpu.memory_space<vmem>>, vector<8x1xf32>
      %13 = tpu.reciprocal %12 {approx = true} : vector<8x1xf32> -> vector<8x1xf32>
      %14 = arith.mulf %12, %13 : vector<8x1xf32>
      %cst = arith.constant 2.000000e+00 : f32
      %15 = vector.broadcast %cst : f32 to vector<8x1xf32>
      %16 = arith.subf %15, %14 : vector<8x1xf32>
      %17 = arith.mulf %13, %16 : vector<8x1xf32>
      %c0_6 = arith.constant 0 : index
      %c0_7 = arith.constant 0 : index
      %18 = vector.load %arg9[%c0_6, %c0_7] : memref<8x8xf32, #tpu.memory_space<vmem>>, vector<8x8xf32>
      %19 = vector.broadcast %17 : vector<8x1xf32> to vector<8x8xf32>
      %20 = arith.mulf %18, %19 : vector<8x8xf32>
      %c0_8 = arith.constant 0 : index
      %c0_9 = arith.constant 0 : index
      %c0_10 = arith.constant 0 : index
      %21 = vector.load %arg6[%c0_8, %c0_9, %c0_10] : memref<1x8x8xf32, #tpu.memory_space<vmem>>, vector<1x8x8xf32>
      %22 = vector.shape_cast %21 : vector<1x8x8xf32> to vector<8x8xf32>
      %23 = vector.shape_cast %20 : vector<8x8xf32> to vector<1x8x8xf32>
      tpu.vector_store %arg6[%c0_8, %c0_9, %c0_10], %23 {strides = array<i32>} : memref<1x8x8xf32, #tpu.memory_space<vmem>>, vector<1x8x8xf32>,
    } else {
    }
    return
  }
  func.func @transform_0(%arg0: i32, %arg1: i32, %arg2: i32) -> (i32, i32, i32) {
    %c0_i32 = arith.constant 0 : i32
    %c0_i32_0 = arith.constant 0 : i32
    return %arg0, %arg1, %c0_i32 : i32, i32, i32
  }
  func.func @transform_1(%arg0: i32, %arg1: i32, %arg2: i32) -> (i32, i32, i32) {
    %c0_i32 = arith.constant 0 : i32
    %c0_i32_0 = arith.constant 0 : i32
    return %arg0, %arg2, %c0_i32 : i32, i32, i32
  }
  func.func @transform_2(%arg0: i32, %arg1: i32, %arg2: i32) -> (i32, i32, i32) {
    %c0_i32 = arith.constant 0 : i32
    %c0_i32_0 = arith.constant 0 : i32
    return %arg0, %arg2, %c0_i32 : i32, i32, i32
  }
  func.func @transform_3(%arg0: i32, %arg1: i32, %arg2: i32) -> (i32, i32, i32) {
    %c0_i32 = arith.constant 0 : i32
    %c0_i32_0 = arith.constant 0 : i32
    return %arg0, %arg1, %c0_i32 : i32, i32, i32
  }
}

module attributes {stable_mosaic.version = 11 : i64} {
  func.func @kernel(%arg0: i32, %arg1: i32, %arg2: i32, %arg3: memref<16x32xf32, #tpu.memory_space<vmem>>, %arg4: memref<32x32xf32, #tpu.memory_space<vmem>>, %arg5: memref<1x32xf32, #tpu.memory_space<vmem>>, %arg6: memref<16x32xf32, #tpu.memory_space<vmem>>, %arg7: memref<16x32xf32, #tpu.memory_space<vmem>>, %arg8: memref<16x32xf32, #tpu.memory_space<vmem>>) attributes {dimension_semantics = [#tpu.dimension_semantics<parallel>, #tpu.dimension_semantics<parallel>, #tpu.dimension_semantics<arbitrary>], iteration_bounds = array<i64: 1, 1, 1>, scalar_prefetch = 0 : i64, scratch_operands = 1 : i64, tpu.core_type = #tpu.core_type<tc>, window_params = [{transform_indices = @transform_0, window_bounds = array<i64: 16, 32>}, {transform_indices = @transform_1, window_bounds = array<i64: 32, 32>}, {transform_indices = @transform_2, window_bounds = array<i64: 1, 32>}, {transform_indices = @transform_3, window_bounds = array<i64: 16, 32>}, {transform_indices = @transform_4, window_bounds = array<i64: 16, 32>}]} {
    %c0_i32 = arith.constant 0 : i32
    %0 = arith.cmpi eq, %arg2, %c0_i32 : i32
    %1 = arith.extui %0 : i1 to i32
    %c0_i32_0 = arith.constant 0 : i32
    %2 = arith.cmpi ne, %1, %c0_i32_0 : i32
    scf.if %2 {
      %cst_10 = arith.constant 0.000000e+00 : f32
      %12 = vector.broadcast %cst_10 : f32 to vector<16x32xf32>
      %c0_11 = arith.constant 0 : index
      %c0_12 = arith.constant 0 : index
      %13 = vector.load %arg8[%c0_11, %c0_12] : memref<16x32xf32, #tpu.memory_space<vmem>>, vector<16x32xf32>
      tpu.vector_store %arg8[%c0_11, %c0_12], %12 {strides = array<i32>} : memref<16x32xf32, #tpu.memory_space<vmem>>, vector<16x32xf32>,
    } else {
    }
    %c0 = arith.constant 0 : index
    %c0_1 = arith.constant 0 : index
    %3 = vector.load %arg3[%c0, %c0_1] : memref<16x32xf32, #tpu.memory_space<vmem>>, vector<16x32xf32>
    %c0_2 = arith.constant 0 : index
    %c0_3 = arith.constant 0 : index
    %4 = vector.load %arg8[%c0_2, %c0_3] : memref<16x32xf32, #tpu.memory_space<vmem>>, vector<16x32xf32>
    %c0_4 = arith.constant 0 : index
    %c0_5 = arith.constant 0 : index
    %5 = vector.load %arg4[%c0_4, %c0_5] : memref<32x32xf32, #tpu.memory_space<vmem>>, vector<32x32xf32>
    %cst = arith.constant dense<0.000000e+00> : vector<16x32xf32>
    %6 = tpu.matmul %3, %5, %cst {dimension_numbers = #tpu.dot_dimension_numbers<[1], [0], [0], [1], [0, 0, 1, 1], [], []>} : vector<16x32xf32>, vector<32x32xf32>, vector<16x32xf32> -> vector<16x32xf32>
    %7 = arith.addf %4, %6 : vector<16x32xf32>
    %c0_6 = arith.constant 0 : index
    %c0_7 = arith.constant 0 : index
    %8 = vector.load %arg8[%c0_6, %c0_7] : memref<16x32xf32, #tpu.memory_space<vmem>>, vector<16x32xf32>
    tpu.vector_store %arg8[%c0_6, %c0_7], %7 {strides = array<i32>} : memref<16x32xf32, #tpu.memory_space<vmem>>, vector<16x32xf32>,
    %c0_i32_8 = arith.constant 0 : i32
    %9 = arith.cmpi eq, %arg2, %c0_i32_8 : i32
    %10 = arith.extui %9 : i1 to i32
    %c0_i32_9 = arith.constant 0 : i32
    %11 = arith.cmpi ne, %10, %c0_i32_9 : i32
    scf.if %11 {
      %c0_10 = arith.constant 0 : index
      %c0_11 = arith.constant 0 : index
      %12 = vector.load %arg8[%c0_10, %c0_11] : memref<16x32xf32, #tpu.memory_space<vmem>>, vector<16x32xf32>
      %c0_12 = arith.constant 0 : index
      %c0_13 = arith.constant 0 : index
      %13 = vector.load %arg5[%c0_12, %c0_13] : memref<1x32xf32, #tpu.memory_space<vmem>>, vector<1x32xf32>
      %14 = vector.broadcast %13 : vector<1x32xf32> to vector<16x32xf32>
      %15 = arith.addf %12, %14 : vector<16x32xf32>
      %c0_14 = arith.constant 0 : index
      %c0_15 = arith.constant 0 : index
      %16 = vector.load %arg6[%c0_14, %c0_15] : memref<16x32xf32, #tpu.memory_space<vmem>>, vector<16x32xf32>
      %17 = arith.addf %15, %16 : vector<16x32xf32>
      %c0_16 = arith.constant 0 : index
      %c0_17 = arith.constant 0 : index
      %18 = vector.load %arg7[%c0_16, %c0_17] : memref<16x32xf32, #tpu.memory_space<vmem>>, vector<16x32xf32>
      tpu.vector_store %arg7[%c0_16, %c0_17], %17 {strides = array<i32>} : memref<16x32xf32, #tpu.memory_space<vmem>>, vector<16x32xf32>,
    } else {
    }
    return
  }
  func.func @transform_0(%arg0: i32, %arg1: i32, %arg2: i32) -> (i32, i32) {
    %c0_i32 = arith.constant 0 : i32
    return %arg0, %arg2 : i32, i32
  }
  func.func @transform_1(%arg0: i32, %arg1: i32, %arg2: i32) -> (i32, i32) {
    %c0_i32 = arith.constant 0 : i32
    return %arg2, %arg1 : i32, i32
  }
  func.func @transform_2(%arg0: i32, %arg1: i32, %arg2: i32) -> (i32, i32) {
    %c0_i32 = arith.constant 0 : i32
    %c0_i32_0 = arith.constant 0 : i32
    return %c0_i32, %arg1 : i32, i32
  }
  func.func @transform_3(%arg0: i32, %arg1: i32, %arg2: i32) -> (i32, i32) {
    %c0_i32 = arith.constant 0 : i32
    return %arg0, %arg1 : i32, i32
  }
  func.func @transform_4(%arg0: i32, %arg1: i32, %arg2: i32) -> (i32, i32) {
    %c0_i32 = arith.constant 0 : i32
    return %arg0, %arg1 : i32, i32
  }
}

module attributes {stable_mosaic.version = 11 : i64} {
  func.func @kernel(%arg0: i32, %arg1: i32, %arg2: i32, %arg3: memref<16x32xf32, #tpu.memory_space<vmem>>, %arg4: memref<32x64xf32, #tpu.memory_space<vmem>>, %arg5: memref<32x64xf32, #tpu.memory_space<vmem>>, %arg6: memref<1x64xf32, #tpu.memory_space<vmem>>, %arg7: memref<1x64xf32, #tpu.memory_space<vmem>>, %arg8: memref<16x64xf32, #tpu.memory_space<vmem>>, %arg9: memref<16x64xf32, #tpu.memory_space<vmem>>, %arg10: memref<16x64xf32, #tpu.memory_space<vmem>>) attributes {dimension_semantics = [#tpu.dimension_semantics<parallel>, #tpu.dimension_semantics<parallel>, #tpu.dimension_semantics<arbitrary>], iteration_bounds = array<i64: 1, 1, 1>, scalar_prefetch = 0 : i64, scratch_operands = 2 : i64, tpu.core_type = #tpu.core_type<tc>, window_params = [{transform_indices = @transform_0, window_bounds = array<i64: 16, 32>}, {transform_indices = @transform_1, window_bounds = array<i64: 32, 64>}, {transform_indices = @transform_2, window_bounds = array<i64: 32, 64>}, {transform_indices = @transform_3, window_bounds = array<i64: 1, 64>}, {transform_indices = @transform_4, window_bounds = array<i64: 1, 64>}, {transform_indices = @transform_5, window_bounds = array<i64: 16, 64>}]} {
    %c0_i32 = arith.constant 0 : i32
    %0 = arith.cmpi eq, %arg2, %c0_i32 : i32
    %1 = arith.extui %0 : i1 to i32
    %c0_i32_0 = arith.constant 0 : i32
    %2 = arith.cmpi ne, %1, %c0_i32_0 : i32
    scf.if %2 {
      %cst_17 = arith.constant 0.000000e+00 : f32
      %17 = vector.broadcast %cst_17 : f32 to vector<16x64xf32>
      %c0_18 = arith.constant 0 : index
      %c0_19 = arith.constant 0 : index
      %18 = vector.load %arg9[%c0_18, %c0_19] : memref<16x64xf32, #tpu.memory_space<vmem>>, vector<16x64xf32>
      tpu.vector_store %arg9[%c0_18, %c0_19], %17 {strides = array<i32>} : memref<16x64xf32, #tpu.memory_space<vmem>>, vector<16x64xf32>,
      %cst_20 = arith.constant 0.000000e+00 : f32
      %19 = vector.broadcast %cst_20 : f32 to vector<16x64xf32>
      %c0_21 = arith.constant 0 : index
      %c0_22 = arith.constant 0 : index
      %20 = vector.load %arg10[%c0_21, %c0_22] : memref<16x64xf32, #tpu.memory_space<vmem>>, vector<16x64xf32>
      tpu.vector_store %arg10[%c0_21, %c0_22], %19 {strides = array<i32>} : memref<16x64xf32, #tpu.memory_space<vmem>>, vector<16x64xf32>,
    } else {
    }
    %c0 = arith.constant 0 : index
    %c0_1 = arith.constant 0 : index
    %3 = vector.load %arg3[%c0, %c0_1] : memref<16x32xf32, #tpu.memory_space<vmem>>, vector<16x32xf32>
    %c0_2 = arith.constant 0 : index
    %c0_3 = arith.constant 0 : index
    %4 = vector.load %arg9[%c0_2, %c0_3] : memref<16x64xf32, #tpu.memory_space<vmem>>, vector<16x64xf32>
    %c0_4 = arith.constant 0 : index
    %c0_5 = arith.constant 0 : index
    %5 = vector.load %arg4[%c0_4, %c0_5] : memref<32x64xf32, #tpu.memory_space<vmem>>, vector<32x64xf32>
    %cst = arith.constant dense<0.000000e+00> : vector<16x64xf32>
    %6 = tpu.matmul %3, %5, %cst {dimension_numbers = #tpu.dot_dimension_numbers<[1], [0], [0], [1], [0, 0, 1, 1], [], []>} : vector<16x32xf32>, vector<32x64xf32>, vector<16x64xf32> -> vector<16x64xf32>
    %7 = arith.addf %4, %6 : vector<16x64xf32>
    %c0_6 = arith.constant 0 : index
    %c0_7 = arith.constant 0 : index
    %8 = vector.load %arg9[%c0_6, %c0_7] : memref<16x64xf32, #tpu.memory_space<vmem>>, vector<16x64xf32>
    tpu.vector_store %arg9[%c0_6, %c0_7], %7 {strides = array<i32>} : memref<16x64xf32, #tpu.memory_space<vmem>>, vector<16x64xf32>,
    %c0_8 = arith.constant 0 : index
    %c0_9 = arith.constant 0 : index
    %9 = vector.load %arg10[%c0_8, %c0_9] : memref<16x64xf32, #tpu.memory_space<vmem>>, vector<16x64xf32>
    %c0_10 = arith.constant 0 : index
    %c0_11 = arith.constant 0 : index
    %10 = vector.load %arg5[%c0_10, %c0_11] : memref<32x64xf32, #tpu.memory_space<vmem>>, vector<32x64xf32>
    %cst_12 = arith.constant dense<0.000000e+00> : vector<16x64xf32>
    %11 = tpu.matmul %3, %10, %cst_12 {dimension_numbers = #tpu.dot_dimension_numbers<[1], [0], [0], [1], [0, 0, 1, 1], [], []>} : vector<16x32xf32>, vector<32x64xf32>, vector<16x64xf32> -> vector<16x64xf32>
    %12 = arith.addf %9, %11 : vector<16x64xf32>
    %c0_13 = arith.constant 0 : index
    %c0_14 = arith.constant 0 : index
    %13 = vector.load %arg10[%c0_13, %c0_14] : memref<16x64xf32, #tpu.memory_space<vmem>>, vector<16x64xf32>
    tpu.vector_store %arg10[%c0_13, %c0_14], %12 {strides = array<i32>} : memref<16x64xf32, #tpu.memory_space<vmem>>, vector<16x64xf32>,
    %c0_i32_15 = arith.constant 0 : i32
    %14 = arith.cmpi eq, %arg2, %c0_i32_15 : i32
    %15 = arith.extui %14 : i1 to i32
    %c0_i32_16 = arith.constant 0 : i32
    %16 = arith.cmpi ne, %15, %c0_i32_16 : i32
    scf.if %16 {
      %c0_17 = arith.constant 0 : index
      %c0_18 = arith.constant 0 : index
      %17 = vector.load %arg9[%c0_17, %c0_18] : memref<16x64xf32, #tpu.memory_space<vmem>>, vector<16x64xf32>
      %c0_19 = arith.constant 0 : index
      %c0_20 = arith.constant 0 : index
      %18 = vector.load %arg6[%c0_19, %c0_20] : memref<1x64xf32, #tpu.memory_space<vmem>>, vector<1x64xf32>
      %19 = vector.broadcast %18 : vector<1x64xf32> to vector<16x64xf32>
      %20 = arith.addf %17, %19 : vector<16x64xf32>
      %c0_21 = arith.constant 0 : index
      %c0_22 = arith.constant 0 : index
      %21 = vector.load %arg10[%c0_21, %c0_22] : memref<16x64xf32, #tpu.memory_space<vmem>>, vector<16x64xf32>
      %c0_23 = arith.constant 0 : index
      %c0_24 = arith.constant 0 : index
      %22 = vector.load %arg7[%c0_23, %c0_24] : memref<1x64xf32, #tpu.memory_space<vmem>>, vector<1x64xf32>
      %23 = vector.broadcast %22 : vector<1x64xf32> to vector<16x64xf32>
      %24 = arith.addf %21, %23 : vector<16x64xf32>
      %25 = arith.negf %20 : vector<16x64xf32>
      %26 = math.exp %25 : vector<16x64xf32>
      %cst_25 = arith.constant 1.000000e+00 : f32
      %27 = vector.broadcast %cst_25 : f32 to vector<16x64xf32>
      %28 = arith.addf %27, %26 : vector<16x64xf32>
      %29 = arith.divf %27, %28 : vector<16x64xf32>
      %30 = arith.mulf %20, %29 : vector<16x64xf32>
      %31 = arith.mulf %30, %24 : vector<16x64xf32>
      %c0_26 = arith.constant 0 : index
      %c0_27 = arith.constant 0 : index
      %32 = vector.load %arg8[%c0_26, %c0_27] : memref<16x64xf32, #tpu.memory_space<vmem>>, vector<16x64xf32>
      tpu.vector_store %arg8[%c0_26, %c0_27], %31 {strides = array<i32>} : memref<16x64xf32, #tpu.memory_space<vmem>>, vector<16x64xf32>,
    } else {
    }
    return
  }
  func.func @transform_0(%arg0: i32, %arg1: i32, %arg2: i32) -> (i32, i32) {
    %c0_i32 = arith.constant 0 : i32
    return %arg0, %arg2 : i32, i32
  }
  func.func @transform_1(%arg0: i32, %arg1: i32, %arg2: i32) -> (i32, i32) {
    %c0_i32 = arith.constant 0 : i32
    return %arg2, %arg1 : i32, i32
  }
  func.func @transform_2(%arg0: i32, %arg1: i32, %arg2: i32) -> (i32, i32) {
    %c0_i32 = arith.constant 0 : i32
    return %arg2, %arg1 : i32, i32
  }
  func.func @transform_3(%arg0: i32, %arg1: i32, %arg2: i32) -> (i32, i32) {
    %c0_i32 = arith.constant 0 : i32
    %c0_i32_0 = arith.constant 0 : i32
    return %c0_i32, %arg1 : i32, i32
  }
  func.func @transform_4(%arg0: i32, %arg1: i32, %arg2: i32) -> (i32, i32) {
    %c0_i32 = arith.constant 0 : i32
    %c0_i32_0 = arith.constant 0 : i32
    return %c0_i32, %arg1 : i32, i32
  }
  func.func @transform_5(%arg0: i32, %arg1: i32, %arg2: i32) -> (i32, i32) {
    %c0_i32 = arith.constant 0 : i32
    return %arg0, %arg1 : i32, i32
  }
}

module attributes {stable_mosaic.version = 11 : i64} {
  func.func @kernel(%arg0: i32, %arg1: i32, %arg2: i32, %arg3: memref<16x64xf32, #tpu.memory_space<vmem>>, %arg4: memref<64x32xf32, #tpu.memory_space<vmem>>, %arg5: memref<1x32xf32, #tpu.memory_space<vmem>>, %arg6: memref<16x32xf32, #tpu.memory_space<vmem>>, %arg7: memref<1x32xf32, #tpu.memory_space<vmem>>, %arg8: memref<16x32xf32, #tpu.memory_space<vmem>>, %arg9: memref<16x32xf32, #tpu.memory_space<vmem>>) attributes {dimension_semantics = [#tpu.dimension_semantics<parallel>, #tpu.dimension_semantics<parallel>, #tpu.dimension_semantics<arbitrary>], iteration_bounds = array<i64: 1, 1, 1>, scalar_prefetch = 0 : i64, scratch_operands = 1 : i64, tpu.core_type = #tpu.core_type<tc>, window_params = [{transform_indices = @transform_0, window_bounds = array<i64: 16, 64>}, {transform_indices = @transform_1, window_bounds = array<i64: 64, 32>}, {transform_indices = @transform_2, window_bounds = array<i64: 1, 32>}, {transform_indices = @transform_3, window_bounds = array<i64: 16, 32>}, {transform_indices = @transform_4, window_bounds = array<i64: 1, 32>}, {transform_indices = @transform_5, window_bounds = array<i64: 16, 32>}]} {
    %c0_i32 = arith.constant 0 : i32
    %0 = arith.cmpi eq, %arg2, %c0_i32 : i32
    %1 = arith.extui %0 : i1 to i32
    %c0_i32_0 = arith.constant 0 : i32
    %2 = arith.cmpi ne, %1, %c0_i32_0 : i32
    scf.if %2 {
      %cst_10 = arith.constant 0.000000e+00 : f32
      %12 = vector.broadcast %cst_10 : f32 to vector<16x32xf32>
      %c0_11 = arith.constant 0 : index
      %c0_12 = arith.constant 0 : index
      %13 = vector.load %arg9[%c0_11, %c0_12] : memref<16x32xf32, #tpu.memory_space<vmem>>, vector<16x32xf32>
      tpu.vector_store %arg9[%c0_11, %c0_12], %12 {strides = array<i32>} : memref<16x32xf32, #tpu.memory_space<vmem>>, vector<16x32xf32>,
    } else {
    }
    %c0 = arith.constant 0 : index
    %c0_1 = arith.constant 0 : index
    %3 = vector.load %arg3[%c0, %c0_1] : memref<16x64xf32, #tpu.memory_space<vmem>>, vector<16x64xf32>
    %c0_2 = arith.constant 0 : index
    %c0_3 = arith.constant 0 : index
    %4 = vector.load %arg9[%c0_2, %c0_3] : memref<16x32xf32, #tpu.memory_space<vmem>>, vector<16x32xf32>
    %c0_4 = arith.constant 0 : index
    %c0_5 = arith.constant 0 : index
    %5 = vector.load %arg4[%c0_4, %c0_5] : memref<64x32xf32, #tpu.memory_space<vmem>>, vector<64x32xf32>
    %cst = arith.constant dense<0.000000e+00> : vector<16x32xf32>
    %6 = tpu.matmul %3, %5, %cst {dimension_numbers = #tpu.dot_dimension_numbers<[1], [0], [0], [1], [0, 0, 1, 1], [], []>} : vector<16x64xf32>, vector<64x32xf32>, vector<16x32xf32> -> vector<16x32xf32>
    %7 = arith.addf %4, %6 : vector<16x32xf32>
    %c0_6 = arith.constant 0 : index
    %c0_7 = arith.constant 0 : index
    %8 = vector.load %arg9[%c0_6, %c0_7] : memref<16x32xf32, #tpu.memory_space<vmem>>, vector<16x32xf32>
    tpu.vector_store %arg9[%c0_6, %c0_7], %7 {strides = array<i32>} : memref<16x32xf32, #tpu.memory_space<vmem>>, vector<16x32xf32>,
    %c0_i32_8 = arith.constant 0 : i32
    %9 = arith.cmpi eq, %arg2, %c0_i32_8 : i32
    %10 = arith.extui %9 : i1 to i32
    %c0_i32_9 = arith.constant 0 : i32
    %11 = arith.cmpi ne, %10, %c0_i32_9 : i32
    scf.if %11 {
      %c0_10 = arith.constant 0 : index
      %c0_11 = arith.constant 0 : index
      %12 = vector.load %arg9[%c0_10, %c0_11] : memref<16x32xf32, #tpu.memory_space<vmem>>, vector<16x32xf32>
      %c0_12 = arith.constant 0 : index
      %c0_13 = arith.constant 0 : index
      %13 = vector.load %arg5[%c0_12, %c0_13] : memref<1x32xf32, #tpu.memory_space<vmem>>, vector<1x32xf32>
      %14 = vector.broadcast %13 : vector<1x32xf32> to vector<16x32xf32>
      %15 = arith.addf %12, %14 : vector<16x32xf32>
      %c0_14 = arith.constant 0 : index
      %c0_15 = arith.constant 0 : index
      %16 = vector.load %arg6[%c0_14, %c0_15] : memref<16x32xf32, #tpu.memory_space<vmem>>, vector<16x32xf32>
      %17 = arith.addf %15, %16 : vector<16x32xf32>
      %18 = arith.mulf %17, %17 : vector<16x32xf32>
      %cst_16 = arith.constant dense<0.000000e+00> : vector<16xf32>
      %19 = vector.multi_reduction <add>, %18, %cst_16 [1] : vector<16x32xf32> to vector<16xf32>
      %20 = vector.shape_cast %19 : vector<16xf32> to vector<16x1xf32>
      %cst_17 = arith.constant 3.200000e+01 : f32
      %21 = vector.broadcast %cst_17 : f32 to vector<16x1xf32>
      %22 = arith.divf %20, %21 : vector<16x1xf32>
      %cst_18 = arith.constant 9.99999997E-7 : f32
      %23 = vector.broadcast %cst_18 : f32 to vector<16x1xf32>
      %24 = arith.addf %22, %23 : vector<16x1xf32>
      %25 = math.rsqrt %24 : vector<16x1xf32>
      %26 = vector.broadcast %25 : vector<16x1xf32> to vector<16x32xf32>
      %27 = arith.mulf %17, %26 : vector<16x32xf32>
      %c0_19 = arith.constant 0 : index
      %c0_20 = arith.constant 0 : index
      %28 = vector.load %arg7[%c0_19, %c0_20] : memref<1x32xf32, #tpu.memory_space<vmem>>, vector<1x32xf32>
      %29 = vector.broadcast %28 : vector<1x32xf32> to vector<16x32xf32>
      %30 = arith.mulf %27, %29 : vector<16x32xf32>
      %c0_21 = arith.constant 0 : index
      %c0_22 = arith.constant 0 : index
      %31 = vector.load %arg8[%c0_21, %c0_22] : memref<16x32xf32, #tpu.memory_space<vmem>>, vector<16x32xf32>
      tpu.vector_store %arg8[%c0_21, %c0_22], %30 {strides = array<i32>} : memref<16x32xf32, #tpu.memory_space<vmem>>, vector<16x32xf32>,
    } else {
    }
    return
  }
  func.func @transform_0(%arg0: i32, %arg1: i32, %arg2: i32) -> (i32, i32) {
    %c0_i32 = arith.constant 0 : i32
    return %arg0, %arg2 : i32, i32
  }
  func.func @transform_1(%arg0: i32, %arg1: i32, %arg2: i32) -> (i32, i32) {
    %c0_i32 = arith.constant 0 : i32
    return %arg2, %arg1 : i32, i32
  }
  func.func @transform_2(%arg0: i32, %arg1: i32, %arg2: i32) -> (i32, i32) {
    %c0_i32 = arith.constant 0 : i32
    %c0_i32_0 = arith.constant 0 : i32
    return %c0_i32, %arg1 : i32, i32
  }
  func.func @transform_3(%arg0: i32, %arg1: i32, %arg2: i32) -> (i32, i32) {
    %c0_i32 = arith.constant 0 : i32
    return %arg0, %arg1 : i32, i32
  }
  func.func @transform_4(%arg0: i32, %arg1: i32, %arg2: i32) -> (i32, i32) {
    %c0_i32 = arith.constant 0 : i32
    %c0_i32_0 = arith.constant 0 : i32
    return %c0_i32, %arg1 : i32, i32
  }
  func.func @transform_5(%arg0: i32, %arg1: i32, %arg2: i32) -> (i32, i32) {
    %c0_i32 = arith.constant 0 : i32
    return %arg0, %arg1 : i32, i32
  }
}

</mosaic_0001>

<bundles_post_ra>
// kernel: transformer_block.5
= control target key start
LH: loop header
LB: loop body
LE: loop exit
PB: predicated region body
PF: predicated region fallthrough
CT: control target
= control target key end

     0   :  { %9 = vsyncpa [#allocation4], 0  ;;  %s301_s0 = inlined_call_operand.hbm [shape: f32[16,32], index: 0, kind: input, shape index: {}]   ;;  %s302_s1 = inlined_call_operand.hbm [shape: f32[32,96], index: 1, kind: input, shape index: {}]   ;;  %s303_s2 = inlined_call_operand.vmem [shape: f32[1,96], index: 2, kind: input, shape index: {}]   ;;  %s304_s3 = inlined_call_operand.vmem [shape: f32[1,32], index: 3, kind: input, shape index: {}]   ;;  %s305_s4 = inlined_call_operand.vmem [shape: f32[16,96], index: 4, kind: output, shape index: {}]  }
   0x1   :  { %s15_s17 = sshll.u32 %s301_s0, 4  ;;  %s16_s17 = int_to_ptr.hbm [resolvable:$true] %s15_s17 }
   0x2   :  { %10 = vsyncpa [#allocation6], 0  ;;  %s237_s18 = smov [#allocation3]   ;;  %s28_s22 = sshll.u32 %s302_s1, 4  ;;  %s29_s22 = int_to_ptr.hbm [resolvable:$true] %s28_s22 }
   0x3   :  { %s17_s19 = sshll.u32 %s237_s18, 4  ;;  %s238_s23 = smov 128   ;;  %s18_s19 = int_to_ptr.vmem [resolvable:$true] %s17_s19 }
   0x4   :  { %s239_s24 = smov 8   ;;  %s240_s25 = smov [#allocation5]  }
   0x5   :  { %23 = dma.hbm_to_vmem [thread:$0]  %s16_s17, 256, %s18_s19, [#allocation4], %s238_s23, %s238_s23, %s239_s24  }
   0x6   :  { %s30_s26 = sshll.u32 %s240_s25, 4  ;;  %s31_s26 = int_to_ptr.vmem [resolvable:$true] %s30_s26 }
   0x7   :  { %36 = dma.hbm_to_vmem [thread:$0]  %s29_s22, 512, %s31_s26, [#allocation6], %s238_s23, %s238_s23, %s239_s24  }
   0x8   :  { %233 = dma.done.wait [#allocation4], 256  }
   0x9   :  { %234 = vsyncadd [#allocation4], 4294967040 }
   0xa   :  { %235 = dma.done.wait [#allocation6], 512  }
   0xb   :  { %236 = vsyncadd [#allocation6], 4294966784  ;;  %v56_v0 = vld [vmem:[#allocation3] sm:$0xff]  ;;  %vm60_vm0 = vcmask 261120   ;;  %v274_v2 = vld [vmem:[#allocation3 + $0x8] sm:$0xff]  ;;  %v241_v6 = vmov 32.0  }
   0xc   :  { %v58_v1 = vmul.f32 %v56_v0, %v56_v0  ;;  %v59_v4 = vmul.f32 %v274_v2, %v274_v2  ;;  %179 = vrcp.f32 %v241_v6  ;;  %v111_v10 = vld [vmem:[#allocation5 + $0x18] sm:$0xff]  ;;  %v110_v11 = vld [vmem:[#allocation5 + $0x10] sm:$0xff]  ;;  %v109_v13 = vld [vmem:[#allocation5 + $0x8] sm:$0xff]  ;;  %vm53_vm2 = vcmask 785408  }
   0xd   :  { %130 = vmatpush.msra.mxu0 %v111_v10  ;;  %167 = vmatpush.msra.mxu1 %v111_v10  ;;  %v108_v14 = vld [vmem:[#allocation5] sm:$0xff]  ;;  %v242_v20 = vmov 0.0  }
   0xe   :  { %v61_v3 = vsel %vm60_vm0, %v58_v1, 0.0  ;;  %v64_v5 = vsel %vm60_vm0, %v59_v4, 0.0  ;;  %54 = vst.msk [vmem:[#allocation2] sm:$0xff] %vm53_vm2, %v242_v20  ;;  %v177_v32 = vld [vmem:[%s304_s3] ss:$0 sm:$0xff] }
   0xf   :  { %62 = vadd.xlane.f32.xlu0 %v61_v3  ;;  %131 = vmatpush.msra.mxu0 %v110_v11  ;;  %55 = vst.msk [vmem:[#allocation2 + $0x8] sm:$0xff] %vm53_vm2, %v242_v20  ;;  %v178_v47 = vld [vmem:[%s303_s2] ss:$0 sm:$0xff] }
  0x10   :  { %168 = vmatpush.msra.mxu1 %v110_v11 }
  0x11   :  { %132 = vmatpush.msra.mxu0 %v109_v13 }
  0x12   :  { %v180_v7 = vpop.eup %179  ;;  %169 = vmatpush.msra.mxu1 %v109_v13 }
  0x13   :  { %v68_v8 = vmul.f32 32.0, %v180_v7  ;;  %133 = vmatpush.msra.mxu0 %v108_v14  ;;  %vm72_vm1 = vweird.f32 %v180_v7 }
  0x14   :  { %170 = vmatpush.msra.mxu1 %v108_v14 }
  0x15   :  { %v69_v9 = vsub.f32 1.0, %v68_v8  ;;  %v106_v43 = vld [vmem:[#allocation2] sm:$0xff] }
  0x16   :  { %v107_v46 = vld [vmem:[#allocation2 + $0x8] sm:$0xff] }
  0x17   :  { %65 = vadd.xlane.f32.xlu0 %v64_v5  ;;  %v70_v12 = vmul.f32 %v180_v7, %v69_v9 }
  0x19   :  { %v71_v15 = vadd.f32 %v180_v7, %v70_v12 }
  0x1b   :  { %v73_v16 = vsel %vm72_vm1, %v180_v7, %v71_v15 }
  0x82   :  { %v63_v17 = vpop.xlane.xlu0 %62 }
  0x83   :  { %v74_v18 = vmul.f32 %v73_v16, %v63_v17 }
  0x85   :  { %v76_v19 = vadd.f32 1e-06, %v74_v18 }
  0x87   :  { %181 = vrsqrt.f32 %v76_v19  ;;  %vm84_vm4 = vweird.f32 %v76_v19 }
  0x8a   :  { %v66_v21 = vpop.xlane.xlu0 %65 }
  0x8b   :  { %v75_v22 = vmul.f32 %v73_v16, %v66_v21 }
  0x8d   :  { %v182_v23 = vpop.eup %181  ;;  %v77_v24 = vadd.f32 1e-06, %v75_v22 }
  0x8e   :  { %v79_v25 = vmul.f32 %v182_v23, %v76_v19  ;;  %vm85_vm3 = vweird.f32 %v182_v23 }
  0x8f   :  { %183 = vrsqrt.f32 %v77_v24  ;;  %vm86_vm5 = vmor %vm84_vm4, %vm85_vm3  ;;  %vm94_vm7 = vweird.f32 %v77_v24 }
  0x90   :  { %v80_v26 = vmul.f32 %v182_v23, %v79_v25 }
  0x92   :  { %v81_v27 = vmul.f32 0.5, %v80_v26 }
  0x94   :  { %v82_v28 = vsub.f32 1.5, %v81_v27 }
  0x95   :  { %v184_v29 = vpop.eup %183 }
  0x96   :  { %v83_v30 = vmul.f32 %v182_v23, %v82_v28  ;;  %v89_v31 = vmul.f32 %v184_v29, %v77_v24  ;;  %vm95_vm6 = vweird.f32 %v184_v29 }
  0x97   :  { %vm96_vm8 = vmor %vm94_vm7, %vm95_vm6 }
  0x98   :  { %v90_v33 = vmul.f32 %v184_v29, %v89_v31  ;;  %v87_v34 = vsel %vm86_vm5, %v182_v23, %v83_v30 }
  0x99   :  { %v98_v35 = vmul.f32 %v87_v34, %v56_v0 }
  0x9a   :  { %v91_v36 = vmul.f32 0.5, %v90_v33 }
  0x9b   :  { %v104_v37 = vmul.f32 %v177_v32, %v98_v35 }
  0x9c   :  { %v92_v38 = vsub.f32 1.5, %v91_v36 }
  0x9d   :  { %165 = vmatmul.msk.f32.vlgmr.msra.gmra.mxu0 %vm60_vm0, %v104_v37 }
  0x9e   :  { %v93_v39 = vmul.f32 %v184_v29, %v92_v38 }
  0xa0   :  { %v97_v40 = vsel %vm96_vm8, %v184_v29, %v93_v39 }
  0xa1   :  { %v99_v41 = vmul.f32 %v97_v40, %v274_v2 }
  0xa3   :  { %v105_v42 = vmul.f32 %v177_v32, %v99_v41 }
  0xa5   :  { %166 = vmatmul.msk.f32.vlgmr.msra.gmra.mxu1 %vm60_vm0, %v105_v42 }
 0x11a   :  { %v135_v44 = vpop.f32.mrf.mxu0 }
 0x11b   :  { %v141_v45 = vadd.f32 %v135_v44, %v106_v43 }
 0x11d   :  { %144 = vst.msk [vmem:[#allocation2] sm:$0xff] %vm53_vm2, %v141_v45 }
 0x122   :  { %v138_v48 = vpop.f32.mrf.mxu1 }
 0x123   :  { %v142_v49 = vadd.f32 %v138_v48, %v107_v46 }
 0x124   :  { %v149_v50 = vld [vmem:[#allocation2] sm:$0xff] }
 0x125   :  { %v155_v51 = vadd.f32 %v178_v47, %v149_v50  ;;  %145 = vst.msk [vmem:[#allocation2 + $0x8] sm:$0xff] %vm53_vm2, %v142_v49 }
 0x127   :  { %157 = vst.msk [vmem:[%s305_s4] sm:$0xff] %vm53_vm2, %v155_v51 }
 0x12c   :  { %v150_v52 = vld [vmem:[#allocation2 + $0x8] sm:$0xff] }
 0x12d   :  { %v156_v53 = vadd.f32 %v178_v47, %v150_v52 }
 0x12f   :  { %158 = vst.msk [vmem:[%s305_s4 + $0x8] sm:$0xff] %vm53_vm2, %v156_v53 }
 0x130   :  { %163 = vsyncpa [#allocation4], 1 }
 0x131   :  { %164 = vsyncpa [#allocation6], 1 }

// kernel: transformer_block.7
= control target key start
LH: loop header
LB: loop body
LE: loop exit
PB: predicated region body
PF: predicated region fallthrough
CT: control target
= control target key end

     0   :  { %vm21_vm0 = vcmask 261120   ;;  %v95_v2 = vmov 0.0   ;;  %s162_s1 = inlined_call_operand.vmem [shape: f32[32,32], index: 1, kind: input, shape index: {}]   ;;  %s163_s2 = inlined_call_operand.vmem [shape: f32[1,32], index: 2, kind: input, shape index: {}]   ;;  %s164_s0 = inlined_call_operand.vmem [shape: f32[16,32], index: 0, kind: input, shape index: {}]   ;;  %s165_s3 = inlined_call_operand.vmem [shape: f32[16,32], index: 3, kind: input, shape index: {}]   ;;  %s166_s4 = inlined_call_operand.vmem [shape: f32[16,32], index: 4, kind: output, shape index: {}]  }
   0x1   :  { %v31_v0 = vld [vmem:[%s162_s1 + $0x18] sm:$0xff]  ;;  %v30_v1 = vld [vmem:[%s162_s1 + $0x10] sm:$0xff]  ;;  %22 = vst.msk [vmem:[#allocation2] sm:$0xff] %vm21_vm0, %v95_v2  ;;  %v29_v3 = vld [vmem:[%s162_s1 + $0x8] sm:$0xff] }
   0x2   :  { %51 = vmatpush.msra.mxu0 %v31_v0  ;;  %89 = vmatpush.msra.mxu1 %v31_v0  ;;  %23 = vst.msk [vmem:[#allocation2 + $0x8] sm:$0xff] %vm21_vm0, %v95_v2  ;;  %v28_v4 = vld [vmem:[%s162_s1] sm:$0xff]  ;;  %v25_v6 = vld [vmem:[%s164_s0 + $0x8] sm:$0xff] }
   0x3   :  { %v24_v5 = vld [vmem:[%s164_s0] sm:$0xff]  ;;  %v78_v18 = vld [vmem:[%s165_s3 + $0x8] sm:$0xff] }
   0x4   :  { %52 = vmatpush.msra.mxu0 %v30_v1  ;;  %90 = vmatpush.msra.mxu1 %v30_v1  ;;  %v94_v13 = vld [vmem:[%s163_s2] ss:$0 sm:$0xff] }
   0x5   :  { %v77_v15 = vld [vmem:[%s165_s3] sm:$0xff] }
   0x6   :  { %53 = vmatpush.msra.mxu0 %v29_v3  ;;  %91 = vmatpush.msra.mxu1 %v29_v3 }
   0x8   :  { %54 = vmatpush.msra.mxu0 %v28_v4  ;;  %92 = vmatpush.msra.mxu1 %v28_v4  ;;  %v26_v7 = vld [vmem:[#allocation2] sm:$0xff] }
   0x9   :  { %87 = vmatmul.msk.f32.vlgmr.msra.gmra.mxu0 %vm21_vm0, %v24_v5  ;;  %88 = vmatmul.msk.f32.vlgmr.msra.gmra.mxu1 %vm21_vm0, %v25_v6  ;;  %v27_v8 = vld [vmem:[#allocation2 + $0x8] sm:$0xff] }
  0x86   :  { %v56_v9 = vpop.f32.mrf.mxu0  ;;  %v59_v10 = vpop.f32.mrf.mxu1 }
  0x87   :  { %v62_v11 = vadd.f32 %v56_v9, %v26_v7  ;;  %v63_v12 = vadd.f32 %v59_v10, %v27_v8 }
  0x89   :  { %64 = vst.msk [vmem:[#allocation2] sm:$0xff] %vm21_vm0, %v62_v11 }
  0x8a   :  { %65 = vst.msk [vmem:[#allocation2 + $0x8] sm:$0xff] %vm21_vm0, %v63_v12 }
  0x90   :  { %v69_v14 = vld [vmem:[#allocation2] sm:$0xff] }
  0x91   :  { %v75_v16 = vadd.f32 %v94_v13, %v69_v14  ;;  %v70_v17 = vld [vmem:[#allocation2 + $0x8] sm:$0xff] }
  0x92   :  { %v76_v19 = vadd.f32 %v94_v13, %v70_v17 }
  0x93   :  { %v79_v20 = vadd.f32 %v77_v15, %v75_v16 }
  0x94   :  { %v80_v21 = vadd.f32 %v78_v18, %v76_v19 }
  0x95   :  { %81 = vst.msk [vmem:[%s166_s4] sm:$0xff] %vm21_vm0, %v79_v20 }
  0x96   :  { %82 = vst.msk [vmem:[%s166_s4 + $0x8] sm:$0xff] %vm21_vm0, %v80_v21 }

// kernel: transformer_block.6
= control target key start
LH: loop header
LB: loop body
LE: loop exit
PB: predicated region body
PF: predicated region fallthrough
CT: control target
= control target key end

     0   :  { %s595_s12 = smov 0   ;;  %s597_s13 = smov 0   ;;  %s652_s0 = inlined_call_operand.vmem [shape: f32[8,8,8], index: 0, kind: input, shape index: {}]   ;;  %s653_s1 = inlined_call_operand.vmem [shape: f32[8,8,8], index: 1, kind: input, shape index: {}]   ;;  %s654_s2 = inlined_call_operand.vmem [shape: f32[8,8,8], index: 2, kind: input, shape index: {}]   ;;  %s655_s3 = inlined_call_operand.vmem [shape: f32[8,8,8], index: 3, kind: output, shape index: {}]  }
   0x1   :  { %s599_s14 = smov 0  }
   0x2 LB: > { %s32_s15 = sadd.s32 1, %s566_s13  ;;  %p502_p0 = scmp.ge.s32.totalorder %s570_s14, 1  ;;  %s570_s14 = sphi %s599_s14, %s13_s14   ;;  %s566_s13 = sphi %s597_s13, %s657_s13   ;;  %s562_s12 = sphi %s595_s12, %s656_s12  }
   0x3   : > { %p34_p1 = scmp.ge.s32.totalorder %s32_s15, 8  ;;  %p190_p2 = scmp.lt.s32.totalorder %s570_s14, 9 }
   0x5   : > { %s659_s15 = smov (%p34_p1, %s32_s15), 0  ;;  %p191_p3 = pnand %p502_p0, %p190_p2 }
   0x6   : > { %p232_p4 = scmp.lt.s32.totalorder (!%p191_p3), %s562_s12, 7 }
   0x7   : > { %194 = sbr.rel (%p191_p3) target bundleno = 627 (0x273), region = 32 }
   0xc   : > { %s661_s12 = smov (!%p232_p4, %s562_s12), 7  ;;  %vm267_vm0 = vcmask 64512   ;;  %vm264_vm1 = vcmask 7168   ;;  %v572_v2 = vmov -inf   ;;  %v307_v3 = vlaneseq }
   0xd   : > { %s613_s16 = sshll.u32 %s661_s12, 3  ;;  %265 = vst.msk [vmem:[#allocation2] sm:$0xff] %vm264_vm1, %v572_v2  ;;  %v573_v10 = vmov 0   ;;  %v574_v11 = vmov 0.0  }
   0xe   : > { %s245_s19 = scalar_lea.vmem %s653_s1, %s613_s16  ;;  %s238_s22 = scalar_lea.vmem %s652_s0, %s613_s16  ;;  %v308_v4 = vshrl.u32 %v307_v3, 7  ;;  %v312_v5 = vand.u32 127, %v307_v3  ;;  %539 = vset.pattern.permute.xlu0 %v573_v10  ;;  %540 = vset.pattern.permute.xlu1 %v573_v10  ;;  %266 = vst.msk [vmem:[#allocation3] sm:$0xff] %vm264_vm1, %v574_v11 }
   0xf   : > { %v277_v0 = vld [vmem:[%s245_s19] sm:$0xff]  ;;  %541 = vset.pattern.permute.xlu2 %v573_v10  ;;  %268 = vst.msk [vmem:[#allocation4] sm:$0xff] %vm267_vm0, %v574_v11  ;;  %s252_s25 = scalar_lea.vmem %s654_s2, %s613_s16  ;;  %s259_s28 = scalar_lea.vmem %s655_s3, %s613_s16 }
  0x10   : > { %507 = vmatpush.xpose.msk.msra.mxu0 %vm267_vm0, %v277_v0  ;;  %v276_v1 = vld [vmem:[%s238_s22] sm:$0xff]  ;;  %vm315_vm2 = vcmp.gt.s32.totalorder %v312_v5, %v308_v4 }
  0x11   : > { %v278_v16 = vld [vmem:[%s252_s25] sm:$0xff] }
  0x12   : > { %366 = vmatpush.msra.mxu1 %v278_v16 }
  0x13   : > { %508 = vmatmul.msk.f32.vlgmr.msra.gmra.mxu0 %vm267_vm0, %v276_v1 }
  0x14   : > { %v317_v12 = vld [vmem:[#allocation2] sm:$0xff] }
  0x15   : > { %v333_v24 = vld [vmem:[#allocation3] sm:$0xff] }
  0x16   : > { %v341_v32 = vld [vmem:[#allocation4] sm:$0xff] }
  0x90   : > { %v303_v6 = vpop.f32.mrf.mxu0 }
  0x91   : > { %v306_v7 = vmul.f32 0.35355338, %v303_v6 }
  0x93   : > { %v316_v8 = vsel %vm315_vm2, -1e+30, %v306_v7 }
  0x94   : > { %v318_v9 = vsel %vm267_vm0, %v316_v8, -inf }
  0x95   : > { %319 = vmax.xlane.f32.xlu0 %v318_v9 }
 0x108   : > { %v320_v13 = vpop.xlane.xlu0 %319 }
 0x109   : > { %v321_v14 = vmax.f32 %v317_v12, %v320_v13 }
 0x10b   : > { %v322_v15 = vsub.f32 %v317_v12, %v321_v14  ;;  %373 = vst.msk [vmem:[#allocation2] sm:$0xff] %vm264_vm1, %v321_v14  ;;  %327 = vperm.xlu0 %539, %v321_v14  }
 0x10d   : > { %v323_v22 = vmul.f32 1.442695, %v322_v15 }
 0x17d   : > { %v328_v17 = vpop.permute.xlu0 %327 }
 0x17e   : > { %v330_v18 = vsub.f32 %v316_v8, %v328_v17 }
 0x180   : > { %v331_v19 = vmul.f32 1.442695, %v330_v18 }
 0x182   : > { %542 = vpow2.f32 %v331_v19 }
 0x183   : > { %544 = vpow2.f32 %v323_v22 }
 0x188   : > { %v543_v20 = vpop.eup %542 }
 0x189   : > { %509 = vmatmul.msk.f32.vlgmr.msra.gmra.mxu1 %vm267_vm0, %v543_v20  ;;  %v335_v21 = vsel %vm267_vm0, %v543_v20, 0.0  ;;  %v545_v23 = vpop.eup %544 }
 0x18a   : > { %336 = vadd.xlane.f32.xlu1 %v335_v21  ;;  %v334_v25 = vmul.f32 %v545_v23, %v333_v24 }
 0x1a3   : > { %344 = vperm.xlu1 %540, %v545_v23  }
 0x1fd   : > { %v337_v26 = vpop.xlane.xlu1 %336 }
 0x1fe   : > { %v338_v27 = vadd.f32 %v337_v26, %v334_v25 }
 0x200   : > { %340 = vst.msk [vmem:[#allocation3] sm:$0xff] %vm264_vm1, %v338_v27 }
 0x206   : > { %v368_v36 = vpop.f32.mrf.mxu1 }
 0x207   : > { %v377_v28 = vld [vmem:[#allocation3] sm:$0xff] }
 0x208   : > { %546 = vrcp.f32 %v377_v28 }
 0x20e   : > { %v547_v29 = vpop.eup %546 }
 0x20f   : > { %v379_v30 = vmul.f32 %v547_v29, %v377_v28 }
 0x211   : > { %v380_v31 = vsub.f32 2.0, %v379_v30 }
 0x213   : > { %v381_v33 = vmul.f32 %v547_v29, %v380_v31 }
 0x215   : > { %v345_v34 = vpop.permute.xlu1 %344  ;;  %385 = vperm.xlu2 %541, %v381_v33  }
 0x216   : > { %v347_v35 = vmul.f32 %v345_v34, %v341_v32 }
 0x218   : > { %v371_v37 = vadd.f32 %v368_v36, %v347_v35 }
 0x21a   : > { %372 = vst.msk [vmem:[#allocation4] sm:$0xff] %vm267_vm0, %v371_v37 }
 0x221   : > { %v382_v38 = vld [vmem:[#allocation4] sm:$0xff] }
 0x26f   : > { %v386_v39 = vpop.permute.xlu2 %385 }
 0x270   : > { %v388_v40 = vmul.f32 %v386_v39, %v382_v38 }
 0x272   : > { %390 = vst.msk [vmem:[%s259_s28] sm:$0xff] %vm267_vm0, %v388_v40 }
 0x273 PF: > { %s13_s14 = sadd.s32 1, %s570_s14   ;;  %s656_s12 = smov %s566_s13 }
 0x274   : > { %p10_p5 = scmp.ge.s32.totalorder %s13_s14, 10   ;;  %s657_s13 = smov %s659_s15 }
 0x276   :  { %12 = sbr.rel (!%p10_p5) target bundleno = 2 (0x2), region = 80 }

// kernel: transformer_block.8
= control target key start
LH: loop header
LB: loop body
LE: loop exit
PB: predicated region body
PF: predicated region fallthrough
CT: control target
= control target key end

     0   :  { %vm24_vm0 = vcmask 523264   ;;  %v197_v2 = vmov 0.0   ;;  %vm37_vm1 = vcmask 261120   ;;  %s280_s1 = inlined_call_operand.vmem [shape: f32[32,64], index: 1, kind: input, shape index: {}]   ;;  %s281_s2 = inlined_call_operand.vmem [shape: f32[32,64], index: 2, kind: input, shape index: {}]   ;;  %s282_s0 = inlined_call_operand.vmem [shape: f32[16,32], index: 0, kind: input, shape index: {}]   ;;  %s283_s3 = inlined_call_operand.vmem [shape: f32[1,64], index: 3, kind: input, shape index: {}]   ;;  %s284_s4 = inlined_call_operand.vmem [shape: f32[1,64], index: 4, kind: input, shape index: {}]   ;;  %s285_s5 = inlined_call_operand.vmem [shape: f32[16,64], index: 5, kind: output, shape index: {}]  }
   0x1   :  { %v36_v0 = vld [vmem:[%s280_s1 + $0x18] sm:$0xff]  ;;  %v35_v1 = vld [vmem:[%s280_s1 + $0x10] sm:$0xff]  ;;  %25 = vst.msk [vmem:[#allocation2] sm:$0xff] %vm24_vm0, %v197_v2  ;;  %v34_v3 = vld [vmem:[%s280_s1 + $0x8] sm:$0xff] }
   0x2   :  { %56 = vmatpush.msra.mxu0 %v36_v0  ;;  %178 = vmatpush.msra.mxu2 %v36_v0  ;;  %26 = vst.msk [vmem:[#allocation2 + $0x8] sm:$0xff] %vm24_vm0, %v197_v2  ;;  %v77_v4 = vld [vmem:[%s281_s2 + $0x18] sm:$0xff]  ;;  %v76_v5 = vld [vmem:[%s281_s2 + $0x10] sm:$0xff]  ;;  %v33_v6 = vld [vmem:[%s280_s1] sm:$0xff] }
   0x3   :  { %27 = vst.msk [vmem:[#allocation3] sm:$0xff] %vm24_vm0, %v197_v2  ;;  %90 = vmatpush.msra.mxu1 %v77_v4  ;;  %182 = vmatpush.msra.mxu3 %v77_v4  ;;  %v29_v7 = vld [vmem:[%s282_s0] sm:$0xff]  ;;  %v30_v8 = vld [vmem:[%s282_s0 + $0x8] sm:$0xff] }
   0x4   :  { %57 = vmatpush.msra.mxu0 %v35_v1  ;;  %179 = vmatpush.msra.mxu2 %v35_v1  ;;  %28 = vst.msk [vmem:[#allocation3 + $0x8] sm:$0xff] %vm24_vm0, %v197_v2  ;;  %v75_v9 = vld [vmem:[%s281_s2 + $0x8] sm:$0xff]  ;;  %v74_v10 = vld [vmem:[%s281_s2] sm:$0xff] }
   0x5   :  { %91 = vmatpush.msra.mxu1 %v76_v5  ;;  %183 = vmatpush.msra.mxu3 %v76_v5  ;;  %v187_v19 = vld [vmem:[%s283_s3] ss:$0 sm:$0xff] }
   0x6   :  { %58 = vmatpush.msra.mxu0 %v34_v3  ;;  %180 = vmatpush.msra.mxu2 %v34_v3  ;;  %v188_v40 = vld [vmem:[%s284_s4] ss:$0 sm:$0xff] }
   0x7   :  { %92 = vmatpush.msra.mxu1 %v75_v9  ;;  %184 = vmatpush.msra.mxu3 %v75_v9 }
   0x8   :  { %59 = vmatpush.msra.mxu0 %v33_v6  ;;  %181 = vmatpush.msra.mxu2 %v33_v6  ;;  %v31_v11 = vld [vmem:[#allocation2] sm:$0xff] }
   0x9   :  { %172 = vmatmul.msk.f32.vlgmr.msra.gmra.mxu0 %vm37_vm1, %v29_v7  ;;  %173 = vmatmul.msk.f32.vlgmr.msra.gmra.mxu2 %vm37_vm1, %v30_v8  ;;  %v32_v15 = vld [vmem:[#allocation2 + $0x8] sm:$0xff] }
   0xa   :  { %93 = vmatpush.msra.mxu1 %v74_v10  ;;  %185 = vmatpush.msra.mxu3 %v74_v10  ;;  %v72_v14 = vld [vmem:[#allocation3] sm:$0xff] }
   0xb   :  { %174 = vmatmul.msk.f32.vlgmr.msra.gmra.mxu1 %vm37_vm1, %v29_v7  ;;  %175 = vmatmul.msk.f32.vlgmr.msra.gmra.mxu3 %vm37_vm1, %v30_v8  ;;  %v73_v21 = vld [vmem:[#allocation3 + $0x8] sm:$0xff] }
  0x86   :  { %v61_v12 = vpop.f32.mrf.mxu0 }
  0x87   :  { %v67_v13 = vadd.f32 %v61_v12, %v31_v11 }
  0x88   :  { %v95_v16 = vpop.f32.mrf.mxu1 }
  0x89   :  { %70 = vst.msk [vmem:[#allocation2] sm:$0xff] %vm24_vm0, %v67_v13  ;;  %v101_v17 = vadd.f32 %v95_v16, %v72_v14 }
  0x8b   :  { %103 = vst.msk [vmem:[#allocation3] sm:$0xff] %vm24_vm0, %v101_v17 }
  0x8c   :  { %v64_v18 = vpop.f32.mrf.mxu2 }
  0x8d   :  { %v68_v20 = vadd.f32 %v64_v18, %v32_v15 }
  0x8e   :  { %v98_v23 = vpop.f32.mrf.mxu3 }
  0x8f   :  { %71 = vst.msk [vmem:[#allocation2 + $0x8] sm:$0xff] %vm24_vm0, %v68_v20  ;;  %v102_v25 = vadd.f32 %v98_v23, %v73_v21 }
  0x90   :  { %v108_v22 = vld [vmem:[#allocation2] sm:$0xff] }
  0x91   :  { %v114_v24 = vadd.f32 %v187_v19, %v108_v22  ;;  %104 = vst.msk [vmem:[#allocation3 + $0x8] sm:$0xff] %vm24_vm0, %v102_v25 }
  0x92   :  { %v116_v42 = vld [vmem:[#allocation3] sm:$0xff] }
  0x93   :  { %v176_v26 = vmul.f32 -1.442695, %v114_v24  ;;  %v122_v48 = vadd.f32 %v188_v40, %v116_v42 }
  0x95   :  { %189 = vpow2.f32 %v176_v26 }
  0x96   :  { %v109_v27 = vld [vmem:[#allocation2 + $0x8] sm:$0xff] }
  0x97   :  { %v115_v28 = vadd.f32 %v187_v19, %v109_v27 }
  0x98   :  { %v117_v54 = vld [vmem:[#allocation3 + $0x8] sm:$0xff] }
  0x99   :  { %v177_v29 = vmul.f32 -1.442695, %v115_v28  ;;  %v123_v59 = vadd.f32 %v188_v40, %v117_v54 }
  0x9b   :  { %v190_v30 = vpop.eup %189  ;;  %191 = vpow2.f32 %v177_v29 }
  0x9c   :  { %v130_v31 = vadd.f32 1.0, %v190_v30 }
  0x9e   :  { %193 = vrcp.f32 %v130_v31  ;;  %v143_v37 = vand.u32 2147483648, %v130_v31  ;;  %vm137_vm2 = vweird.f32 %v130_v31  ;;  %v141_v39 = vand.u32 2147483647, %v130_v31 }
  0xa0   :  { %v144_v45 = vor.u32 1.1754944e-38, %v143_v37  ;;  %vm142_vm5 = vcmp.eq.f32.partialorder %v141_v39, 8.507059e+37 }
  0xa1   :  { %v192_v32 = vpop.eup %191 }
  0xa2   :  { %v131_v33 = vadd.f32 1.0, %v192_v32 }
  0xa4   :  { %v194_v34 = vpop.eup %193  ;;  %195 = vrcp.f32 %v131_v33  ;;  %v158_v50 = vand.u32 2147483648, %v131_v33  ;;  %v156_v53 = vand.u32 2147483647, %v131_v33  ;;  %vm152_vm7 = vweird.f32 %v131_v33 }
  0xa5   :  { %v133_v35 = vmul.f32 %v194_v34, %v130_v31  ;;  %vm138_vm3 = vweird.f32 %v194_v34 }
  0xa6   :  { %vm139_vm4 = vmor %vm137_vm2, %vm138_vm3  ;;  %v159_v57 = vor.u32 1.1754944e-38, %v158_v50  ;;  %vm157_vm9 = vcmp.eq.f32.partialorder %v156_v53, 8.507059e+37 }
  0xa7   :  { %v134_v36 = vsub.f32 1.0, %v133_v35 }
  0xa9   :  { %v135_v38 = vmul.f32 %v194_v34, %v134_v36 }
  0xaa   :  { %v196_v41 = vpop.eup %195 }
  0xab   :  { %v136_v43 = vadd.f32 %v194_v34, %v135_v38  ;;  %v148_v44 = vmul.f32 %v196_v41, %v131_v33  ;;  %vm153_vm6 = vweird.f32 %v196_v41 }
  0xac   :  { %vm154_vm8 = vmor %vm152_vm7, %vm153_vm6 }
  0xad   :  { %v140_v46 = vsel %vm139_vm4, %v194_v34, %v136_v43  ;;  %v149_v47 = vsub.f32 1.0, %v148_v44 }
  0xae   :  { %v145_v49 = vsel %vm142_vm5, %v144_v45, %v140_v46 }
  0xaf   :  { %v162_v51 = vmul.f32 %v145_v49, %v114_v24  ;;  %v150_v52 = vmul.f32 %v196_v41, %v149_v47 }
  0xb1   :  { %v151_v55 = vadd.f32 %v196_v41, %v150_v52  ;;  %v164_v56 = vmul.f32 %v162_v51, %v122_v48 }
  0xb3   :  { %v155_v58 = vsel %vm154_vm8, %v196_v41, %v151_v55  ;;  %166 = vst.msk [vmem:[%s285_s5] sm:$0xff] %vm24_vm0, %v164_v56 }
  0xb4   :  { %v160_v60 = vsel %vm157_vm9, %v159_v57, %v155_v58 }
  0xb5   :  { %v163_v61 = vmul.f32 %v160_v60, %v115_v28 }
  0xb7   :  { %v165_v62 = vmul.f32 %v163_v61, %v123_v59 }
  0xb9   :  { %167 = vst.msk [vmem:[%s285_s5 + $0x8] sm:$0xff] %vm24_vm0, %v165_v62 }

// kernel: transformer_block.9
= control target key start
LH: loop header
LB: loop body
LE: loop exit
PB: predicated region body
PF: predicated region fallthrough
CT: control target
= control target key end

     0   :  { %vm25_vm0 = vcmask 261120   ;;  %v206_v2 = vmov 0.0   ;;  %s294_s0 = inlined_call_operand.vmem [shape: f32[16,64], index: 0, kind: input, shape index: {}]   ;;  %s295_s1 = inlined_call_operand.vmem [shape: f32[64,32], index: 1, kind: input, shape index: {}]   ;;  %s296_s2 = inlined_call_operand.vmem [shape: f32[1,32], index: 2, kind: input, shape index: {}]   ;;  %s297_s3 = inlined_call_operand.vmem [shape: f32[16,32], index: 3, kind: input, shape index: {}]   ;;  %s298_s4 = inlined_call_operand.vmem [shape: f32[1,32], index: 4, kind: input, shape index: {}]   ;;  %s299_s5 = inlined_call_operand.hbm [shape: f32[16,32], index: 5, kind: output, shape index: {}]  }
   0x1   :  { %v39_v0 = vld [vmem:[%s295_s1 + $0x38] sm:$0xff]  ;;  %v38_v1 = vld [vmem:[%s295_s1 + $0x30] sm:$0xff]  ;;  %26 = vst.msk [vmem:[#allocation2] sm:$0xff] %vm25_vm0, %v206_v2  ;;  %v37_v3 = vld [vmem:[%s295_s1 + $0x28] sm:$0xff] }
   0x2   :  { %55 = vmatpush.msra.mxu0 %v39_v0  ;;  %159 = vmatpush.msra.mxu1 %v39_v0  ;;  %27 = vst.msk [vmem:[#allocation2 + $0x8] sm:$0xff] %vm25_vm0, %v206_v2  ;;  %v36_v4 = vld [vmem:[%s295_s1 + $0x20] sm:$0xff] }
   0x4   :  { %56 = vmatpush.msra.mxu0 %v38_v1  ;;  %160 = vmatpush.msra.mxu1 %v38_v1 }
   0x5   :  { %10 = vsyncpa [#allocation4], 0  ;;  %v35_v5 = vld [vmem:[%s295_s1 + $0x18] sm:$0xff]  ;;  %v34_v6 = vld [vmem:[%s295_s1 + $0x10] sm:$0xff]  ;;  %vm40_vm1 = vcmask 523264   ;;  %v207_v30 = vmov 32.0  }
   0x6   :  { %57 = vmatpush.msra.mxu0 %v37_v3  ;;  %161 = vmatpush.msra.mxu1 %v37_v3  ;;  %v33_v7 = vld [vmem:[%s295_s1 + $0x8] sm:$0xff]  ;;  %v32_v8 = vld [vmem:[%s295_s1] sm:$0xff]  ;;  %174 = vrcp.f32 %v207_v30  ;;  %s208_s17 = smov [#allocation3]   ;;  %s145_s21 = sshll.u32 %s299_s5, 4  ;;  %s146_s21 = int_to_ptr.hbm [resolvable:$true] %s145_s21 }
   0x7   :  { %v28_v9 = vld [vmem:[%s294_s0] sm:$0xff]  ;;  %v29_v10 = vld [vmem:[%s294_s0 + $0x8] sm:$0xff]  ;;  %s143_s18 = sshll.u32 %s208_s17, 4  ;;  %s210_s22 = smov 8   ;;  %s144_s18 = int_to_ptr.vmem [resolvable:$true] %s143_s18 }
   0x8   :  { %58 = vmatpush.msra.mxu0 %v36_v4  ;;  %162 = vmatpush.msra.mxu1 %v36_v4  ;;  %v30_v11 = vld [vmem:[#allocation2] sm:$0xff]  ;;  %v87_v23 = vld [vmem:[%s297_s3 + $0x8] sm:$0xff] }
   0x9   :  { %v31_v12 = vld [vmem:[#allocation2 + $0x8] sm:$0xff]  ;;  %v172_v17 = vld [vmem:[%s296_s2] ss:$0 sm:$0xff] }
   0xa   :  { %59 = vmatpush.msra.mxu0 %v35_v5  ;;  %163 = vmatpush.msra.mxu1 %v35_v5  ;;  %v86_v19 = vld [vmem:[%s297_s3] sm:$0xff] }
   0xb   :  { %v173_v51 = vld [vmem:[%s298_s4] ss:$0 sm:$0xff]  ;;  %s209_s4 = smov 128  }
   0xc   :  { %60 = vmatpush.msra.mxu0 %v34_v6  ;;  %164 = vmatpush.msra.mxu1 %v34_v6  ;;  %v175_v31 = vpop.eup %174 }
   0xd   :  { %v99_v32 = vmul.f32 32.0, %v175_v31  ;;  %vm103_vm2 = vweird.f32 %v175_v31 }
   0xe   :  { %61 = vmatpush.msra.mxu0 %v33_v7  ;;  %165 = vmatpush.msra.mxu1 %v33_v7 }
   0xf   :  { %v100_v33 = vsub.f32 1.0, %v99_v32 }
  0x10   :  { %62 = vmatpush.msra.mxu0 %v32_v8  ;;  %166 = vmatpush.msra.mxu1 %v32_v8 }
  0x11   :  { %157 = vmatmul.msk.f32.vlgmr.msra.gmra.mxu0 %vm40_vm1, %v28_v9  ;;  %158 = vmatmul.msk.f32.vlgmr.msra.gmra.mxu1 %vm40_vm1, %v29_v10  ;;  %v101_v34 = vmul.f32 %v175_v31, %v100_v33 }
  0x13   :  { %v102_v35 = vadd.f32 %v175_v31, %v101_v34 }
  0x15   :  { %v104_v36 = vsel %vm103_vm2, %v175_v31, %v102_v35 }
  0x8e   :  { %v64_v13 = vpop.f32.mrf.mxu0  ;;  %v67_v14 = vpop.f32.mrf.mxu1 }
  0x8f   :  { %v70_v15 = vadd.f32 %v64_v13, %v30_v11  ;;  %v71_v16 = vadd.f32 %v67_v14, %v31_v12 }
  0x91   :  { %73 = vst.msk [vmem:[#allocation2] sm:$0xff] %vm25_vm0, %v70_v15 }
  0x92   :  { %74 = vst.msk [vmem:[#allocation2 + $0x8] sm:$0xff] %vm25_vm0, %v71_v16 }
  0x98   :  { %v78_v18 = vld [vmem:[#allocation2] sm:$0xff] }
  0x99   :  { %v84_v20 = vadd.f32 %v172_v17, %v78_v18  ;;  %v79_v21 = vld [vmem:[#allocation2 + $0x8] sm:$0xff] }
  0x9a   :  { %v85_v22 = vadd.f32 %v172_v17, %v79_v21 }
  0x9b   :  { %v88_v24 = vadd.f32 %v86_v19, %v84_v20 }
  0x9c   :  { %v89_v26 = vadd.f32 %v87_v23, %v85_v22 }
  0x9d   :  { %v90_v25 = vmul.f32 %v88_v24, %v88_v24 }
  0x9e   :  { %v91_v28 = vmul.f32 %v89_v26, %v89_v26 }
  0x9f   :  { %v92_v27 = vsel %vm25_vm0, %v90_v25, 0.0 }
  0xa0   :  { %93 = vadd.xlane.f32.xlu0 %v92_v27  ;;  %v95_v29 = vsel %vm25_vm0, %v91_v28, 0.0 }
  0xa8   :  { %96 = vadd.xlane.f32.xlu0 %v95_v29 }
 0x113   :  { %v94_v37 = vpop.xlane.xlu0 %93 }
 0x114   :  { %v105_v38 = vmul.f32 %v104_v36, %v94_v37 }
 0x116   :  { %v107_v39 = vadd.f32 1e-06, %v105_v38 }
 0x118   :  { %176 = vrsqrt.f32 %v107_v39  ;;  %vm115_vm4 = vweird.f32 %v107_v39 }
 0x11b   :  { %v97_v40 = vpop.xlane.xlu0 %96 }
 0x11c   :  { %v106_v41 = vmul.f32 %v104_v36, %v97_v40 }
 0x11e   :  { %v177_v42 = vpop.eup %176  ;;  %v108_v43 = vadd.f32 1e-06, %v106_v41 }
 0x11f   :  { %v110_v44 = vmul.f32 %v177_v42, %v107_v39  ;;  %vm116_vm3 = vweird.f32 %v177_v42 }
 0x120   :  { %178 = vrsqrt.f32 %v108_v43  ;;  %vm117_vm5 = vmor %vm115_vm4, %vm116_vm3  ;;  %vm125_vm7 = vweird.f32 %v108_v43 }
 0x121   :  { %v111_v45 = vmul.f32 %v177_v42, %v110_v44 }
 0x123   :  { %v112_v46 = vmul.f32 0.5, %v111_v45 }
 0x125   :  { %v113_v47 = vsub.f32 1.5, %v112_v46 }
 0x126   :  { %v179_v48 = vpop.eup %178 }
 0x127   :  { %v114_v49 = vmul.f32 %v177_v42, %v113_v47  ;;  %v120_v50 = vmul.f32 %v179_v48, %v108_v43  ;;  %vm126_vm6 = vweird.f32 %v179_v48 }
 0x128   :  { %vm127_vm8 = vmor %vm125_vm7, %vm126_vm6 }
 0x129   :  { %v118_v52 = vsel %vm117_vm5, %v177_v42, %v114_v49  ;;  %v121_v53 = vmul.f32 %v179_v48, %v120_v50 }
 0x12a   :  { %v129_v54 = vmul.f32 %v118_v52, %v88_v24 }
 0x12b   :  { %v122_v55 = vmul.f32 0.5, %v121_v53 }
 0x12c   :  { %v135_v56 = vmul.f32 %v173_v51, %v129_v54 }
 0x12d   :  { %v123_v57 = vsub.f32 1.5, %v122_v55 }
 0x12e   :  { %137 = vst.msk [vmem:[#allocation3] sm:$0xff] %vm25_vm0, %v135_v56 }
 0x12f   :  { %v124_v58 = vmul.f32 %v179_v48, %v123_v57 }
 0x131   :  { %v128_v59 = vsel %vm127_vm8, %v179_v48, %v124_v58 }
 0x132   :  { %v130_v60 = vmul.f32 %v128_v59, %v89_v26 }
 0x134   :  { %v136_v61 = vmul.f32 %v173_v51, %v130_v60 }
 0x136   :  { %138 = vst.msk [vmem:[#allocation3 + $0x8] sm:$0xff] %vm25_vm0, %v136_v61 }
 0x137   :  { %151 = dma.vmem_to_hbm [thread:$0]  %s144_s18, 256, %s146_s21, [#allocation4], %s209_s4, %s209_s4, %s210_s22  }
 0x138   :  { %204 = dma.done.wait [#allocation4], 256  }
 0x139   :  { %205 = vsyncadd [#allocation4], 4294967040 }
 0x13a   :  { %156 = vsyncpa [#allocation4], 1 }

</bundles_post_ra>
